<compile_context>
chip_gen: v6e
topology: v6e:2x2x1
jax: 0.10.0
libtpu: 0.0.40
codegen_flags: <defaults>
</compile_context>

<pallas_src>
import numpy as np

import jax
import jax.numpy as jnp
from jax import lax
from jax.experimental import pallas as pl
from jax.experimental.pallas import tpu as pltpu


# ----------------------------------------------------------------------------
# Layout constants
# ----------------------------------------------------------------------------
RS = 23        # flattened spatial row stride (subsampled padded input row length)
ORIGIN = 24    # lane offset of spatial (0,0) inside the xs / v2 buffers
XS_W = 768     # lane width of the flattened conv1 input  (>= 96 + V2_W)
V2_W = 640     # lane width of the conv1 output / conv3 input
OUT_W = 512    # lane width of the conv3 output (spatial (y,x) -> lane y*23+x)
H_OUT = 19
W_OUT = 19


# ----------------------------------------------------------------------------
# Fused kernel: conv1 -> (+bias +0.5) -> conv3 -> (+bias), all VMEM resident
# ----------------------------------------------------------------------------
def _fused_conv_kernel(xs_ref, w1_ref, b1_ref, w3_ref, b3_ref, mask_ref, out_ref):
    xs = xs_ref[...]                                       # (8, XS_W) f32

    # ---- conv1 (2->8, k=5, stride=2, pad=2, dil=2) as 25 unit-stride taps ----
    acc1 = jnp.zeros((8, V2_W), jnp.float32)
    for kh in range(5):
        for kw in range(5):
            s = kh * RS + kw                               # static lane shift in [0, 96]
            acc1 = acc1 + jnp.dot(w1_ref[kh * 5 + kw],     # (8, 8) per-tap weights
                                  xs[:, s:s + V2_W],       # (8, V2_W) shifted window
                                  preferred_element_type=jnp.float32)

    # bias + 0.5, then zero everything outside the valid 19x19 region.
    # The zeros double as conv3's implicit `padding=1` zeros.
    v2 = (acc1 + b1_ref[...] + jnp.float32(0.5)) * mask_ref[...]   # (8, V2_W)

    # ---- conv3 (8->2, k=3, stride=1, pad=1) as 9 unit-stride taps ----
    acc3 = jnp.zeros((8, OUT_W), jnp.float32)
    for kh in range(3):
        for kw in range(3):
            s = ORIGIN + (kh - 1) * RS + (kw - 1)          # static lane shift in [0, 48]
            acc3 = acc3 + jnp.dot(w3_ref[kh * 3 + kw],     # (8, 8) per-tap weights
                                  v2[:, s:s + OUT_W],
                                  preferred_element_type=jnp.float32)

    out_ref[...] = acc3 + b3_ref[...]                      # (8, OUT_W), lane-dense store


# ----------------------------------------------------------------------------
# Wrapper: minimal layout plumbing around the single pallas_call
# ----------------------------------------------------------------------------
def model_forward(x_nchw, params):
    # conv1 (stride 2, dilation 2, pad 2) only reads even rows/cols of the padded
    # input -> subsample once; both convs become unit-stride tap sums in-kernel.
    x = x_nchw.reshape(2, 41, 41)
    xp = jnp.pad(x, ((0, 0), (2, 2), (2, 2)))              # (2, 45, 45)
    xs = xp[:, ::2, ::2]                                   # (2, 23, 23)
    xs_flat = xs.reshape(2, RS * RS)                       # (2, 529), row stride 23
    xs_flat = jnp.pad(xs_flat,
                      ((0, 6), (ORIGIN, XS_W - ORIGIN - RS * RS)))   # (8, XS_W)

    # Weights packed as per-tap (C_out_pad=8, C_in_pad=8) matrices.
    w1t = jnp.transpose(params["w1"], (2, 3, 0, 1)).reshape(25, 8, 2)
    w1t = jnp.pad(w1t, ((0, 0), (0, 0), (0, 6)))           # (25, 8, 8)
    b1 = params["b1"].reshape(8, 1)

    w3t = jnp.transpose(params["w3"], (2, 3, 0, 1)).reshape(9, 2, 8)
    w3t = jnp.pad(w3t, ((0, 0), (0, 6), (0, 0)))           # (9, 8, 8)
    b3 = jnp.pad(params["b3"].reshape(2, 1), ((0, 6), (0, 0)))   # (8, 1)

    # Validity mask over v2 lanes (compile-time constant, built with numpy).
    q = np.arange(V2_W) - ORIGIN
    valid = (q >= 0) & ((q % RS) < W_OUT) & ((q // RS) < H_OUT)
    mask = jnp.asarray(valid.astype(np.float32)).reshape(1, V2_W)

    vmem = pl.BlockSpec(memory_space=pltpu.MemorySpace.VMEM)
    out = pl.pallas_call(
        _fused_conv_kernel,
        out_shape=jax.ShapeDtypeStruct((8, OUT_W), jnp.float32),
        in_specs=[vmem, vmem, vmem, vmem, vmem, vmem],
        out_specs=vmem,
    )(xs_flat, w1t, b1, w3t, b3, mask)

    # Lanes 0..436 hold a (19, 23) row-stride grid; drop padded columns/rows
    # BEFORE anything downstream sees them.
    out = out[:2, :H_OUT * RS].reshape(2, H_OUT, RS)[:, :, :W_OUT]
    return out[None]                                       # (1, 2, 19, 19) NCHW


# ----------------------------------------------------------------------------
# Pure-JAX reference (lax convs) for correctness checking
# ----------------------------------------------------------------------------
def _reference_forward(x_nchw, params):
    v1 = lax.conv_general_dilated(
        x_nchw, params["w1"], window_strides=(2, 2),
        padding=((2, 2), (2, 2)), rhs_dilation=(2, 2),
        dimension_numbers=("NCHW", "OIHW", "NCHW"))
    v2 = v1 + params["b1"][None, :, None, None] + 0.5
    v3 = lax.conv_general_dilated(
        v2, params["w3"], window_strides=(1, 1),
        padding=((1, 1), (1, 1)),
        dimension_numbers=("NCHW", "OIHW", "NCHW"))
    return v3 + params["b3"][None, :, None, None]


def _init_params(key):
    k1, k2, k3, k4 = jax.random.split(key, 4)
    # conv1: Conv2d(2, 8, 5)
    fan1 = 2 * 5 * 5
    w1 = jax.random.uniform(k1, (8, 2, 5, 5), jnp.float32,
                            -1.0 / jnp.sqrt(fan1), 1.0 / jnp.sqrt(fan1))
    b1 = jax.random.uniform(k2, (8,), jnp.float32,
                            -1.0 / jnp.sqrt(fan1), 1.0 / jnp.sqrt(fan1))
    # conv3: adjusted to Conv2d(8, 2, 3) (see TODO(synk) above)
    fan3 = 8 * 3 * 3
    w3 = jax.random.uniform(k3, (2, 8, 3, 3), jnp.float32,
                            -1.0 / jnp.sqrt(fan3), 1.0 / jnp.sqrt(fan3))
    b3 = jax.random.uniform(k4, (2,), jnp.float32,
                            -1.0 / jnp.sqrt(fan3), 1.0 / jnp.sqrt(fan3))
    return {"w1": w1, "b1": b1, "w3": w3, "b3": b3}


if __name__ == "__main__":
    key = jax.random.PRNGKey(0)
    kx, kp = jax.random.split(key)
    x1 = jax.random.normal(kx, (1, 2, 41, 41), jnp.float32)  # matches torch.randn(1,2,41,41)
    params = _init_params(kp)

    fwd = jax.jit(model_forward)
    out = jax.block_until_ready(fwd(x1, params))

    ref = jax.block_until_ready(_reference_forward(x1, params))
    assert out.shape == (1, 2, 19, 19), out.shape
    max_err = float(jnp.max(jnp.abs(out - ref)))
    assert jnp.allclose(out, ref, atol=2e-4, rtol=2e-4), max_err

    print("KERNEL_OK")
</pallas_src>

<mosaic_0001>
module attributes {stable_mosaic.version = 11 : i64} {
  func.func @_fused_conv_kernel(%arg0: memref<8x768xf32, #tpu.memory_space<vmem>>, %arg1: memref<25x8x8xf32, #tpu.memory_space<vmem>>, %arg2: memref<8x1xf32, #tpu.memory_space<vmem>>, %arg3: memref<9x8x8xf32, #tpu.memory_space<vmem>>, %arg4: memref<8x1xf32, #tpu.memory_space<vmem>>, %arg5: memref<1x640xf32, #tpu.memory_space<vmem>>, %arg6: memref<8x512xf32, #tpu.memory_space<vmem>>) attributes {dimension_semantics = [], scalar_prefetch = 0 : i64, scratch_operands = 0 : i64, tpu.core_type = #tpu.core_type<tc>} {
    %c0 = arith.constant 0 : index
    %c0_0 = arith.constant 0 : index
    %0 = vector.load %arg0[%c0, %c0_0] : memref<8x768xf32, #tpu.memory_space<vmem>>, vector<8x768xf32>
    %cst = arith.constant 0.000000e+00 : f32
    %1 = vector.broadcast %cst : f32 to vector<8x640xf32>
    %c0_1 = arith.constant 0 : index
    %c0_2 = arith.constant 0 : index
    %c0_3 = arith.constant 0 : index
    %2 = vector.load %arg1[%c0_1, %c0_2, %c0_3] : memref<25x8x8xf32, #tpu.memory_space<vmem>>, vector<1x8x8xf32>
    %3 = vector.shape_cast %2 : vector<1x8x8xf32> to vector<8x8xf32>
    %4 = vector.extract_strided_slice %0 {offsets = [0, 0], sizes = [8, 640], strides = [1, 1]} : vector<8x768xf32> to vector<8x640xf32>
    %cst_4 = arith.constant dense<0.000000e+00> : vector<8x640xf32>
    %5 = tpu.matmul %3, %4, %cst_4 {dimension_numbers = #tpu.dot_dimension_numbers<[1], [0], [0], [1], [0, 0, 1, 1], [], []>} : vector<8x8xf32>, vector<8x640xf32>, vector<8x640xf32> -> vector<8x640xf32>
    %6 = arith.addf %1, %5 : vector<8x640xf32>
    %c1 = arith.constant 1 : index
    %c0_5 = arith.constant 0 : index
    %c0_6 = arith.constant 0 : index
    %7 = vector.load %arg1[%c1, %c0_5, %c0_6] : memref<25x8x8xf32, #tpu.memory_space<vmem>>, vector<1x8x8xf32>
    %8 = vector.shape_cast %7 : vector<1x8x8xf32> to vector<8x8xf32>
    %9 = vector.extract_strided_slice %0 {offsets = [0, 1], sizes = [8, 640], strides = [1, 1]} : vector<8x768xf32> to vector<8x640xf32>
    %cst_7 = arith.constant dense<0.000000e+00> : vector<8x640xf32>
    %10 = tpu.matmul %8, %9, %cst_7 {dimension_numbers = #tpu.dot_dimension_numbers<[1], [0], [0], [1], [0, 0, 1, 1], [], []>} : vector<8x8xf32>, vector<8x640xf32>, vector<8x640xf32> -> vector<8x640xf32>
    %11 = arith.addf %6, %10 : vector<8x640xf32>
    %c2 = arith.constant 2 : index
    %c0_8 = arith.constant 0 : index
    %c0_9 = arith.constant 0 : index
    %12 = vector.load %arg1[%c2, %c0_8, %c0_9] : memref<25x8x8xf32, #tpu.memory_space<vmem>>, vector<1x8x8xf32>
    %13 = vector.shape_cast %12 : vector<1x8x8xf32> to vector<8x8xf32>
    %14 = vector.extract_strided_slice %0 {offsets = [0, 2], sizes = [8, 640], strides = [1, 1]} : vector<8x768xf32> to vector<8x640xf32>
    %cst_10 = arith.constant dense<0.000000e+00> : vector<8x640xf32>
    %15 = tpu.matmul %13, %14, %cst_10 {dimension_numbers = #tpu.dot_dimension_numbers<[1], [0], [0], [1], [0, 0, 1, 1], [], []>} : vector<8x8xf32>, vector<8x640xf32>, vector<8x640xf32> -> vector<8x640xf32>
    %16 = arith.addf %11, %15 : vector<8x640xf32>
    %c3 = arith.constant 3 : index
    %c0_11 = arith.constant 0 : index
    %c0_12 = arith.constant 0 : index
    %17 = vector.load %arg1[%c3, %c0_11, %c0_12] : memref<25x8x8xf32, #tpu.memory_space<vmem>>, vector<1x8x8xf32>
    %18 = vector.shape_cast %17 : vector<1x8x8xf32> to vector<8x8xf32>
    %19 = vector.extract_strided_slice %0 {offsets = [0, 3], sizes = [8, 640], strides = [1, 1]} : vector<8x768xf32> to vector<8x640xf32>
    %cst_13 = arith.constant dense<0.000000e+00> : vector<8x640xf32>
    %20 = tpu.matmul %18, %19, %cst_13 {dimension_numbers = #tpu.dot_dimension_numbers<[1], [0], [0], [1], [0, 0, 1, 1], [], []>} : vector<8x8xf32>, vector<8x640xf32>, vector<8x640xf32> -> vector<8x640xf32>
    %21 = arith.addf %16, %20 : vector<8x640xf32>
    %c4 = arith.constant 4 : index
    %c0_14 = arith.constant 0 : index
    %c0_15 = arith.constant 0 : index
    %22 = vector.load %arg1[%c4, %c0_14, %c0_15] : memref<25x8x8xf32, #tpu.memory_space<vmem>>, vector<1x8x8xf32>
    %23 = vector.shape_cast %22 : vector<1x8x8xf32> to vector<8x8xf32>
    %24 = vector.extract_strided_slice %0 {offsets = [0, 4], sizes = [8, 640], strides = [1, 1]} : vector<8x768xf32> to vector<8x640xf32>
    %cst_16 = arith.constant dense<0.000000e+00> : vector<8x640xf32>
    %25 = tpu.matmul %23, %24, %cst_16 {dimension_numbers = #tpu.dot_dimension_numbers<[1], [0], [0], [1], [0, 0, 1, 1], [], []>} : vector<8x8xf32>, vector<8x640xf32>, vector<8x640xf32> -> vector<8x640xf32>
    %26 = arith.addf %21, %25 : vector<8x640xf32>
    %c5 = arith.constant 5 : index
    %c0_17 = arith.constant 0 : index
    %c0_18 = arith.constant 0 : index
    %27 = vector.load %arg1[%c5, %c0_17, %c0_18] : memref<25x8x8xf32, #tpu.memory_space<vmem>>, vector<1x8x8xf32>
    %28 = vector.shape_cast %27 : vector<1x8x8xf32> to vector<8x8xf32>
    %29 = vector.extract_strided_slice %0 {offsets = [0, 23], sizes = [8, 640], strides = [1, 1]} : vector<8x768xf32> to vector<8x640xf32>
    %cst_19 = arith.constant dense<0.000000e+00> : vector<8x640xf32>
    %30 = tpu.matmul %28, %29, %cst_19 {dimension_numbers = #tpu.dot_dimension_numbers<[1], [0], [0], [1], [0, 0, 1, 1], [], []>} : vector<8x8xf32>, vector<8x640xf32>, vector<8x640xf32> -> vector<8x640xf32>
    %31 = arith.addf %26, %30 : vector<8x640xf32>
    %c6 = arith.constant 6 : index
    %c0_20 = arith.constant 0 : index
    %c0_21 = arith.constant 0 : index
    %32 = vector.load %arg1[%c6, %c0_20, %c0_21] : memref<25x8x8xf32, #tpu.memory_space<vmem>>, vector<1x8x8xf32>
    %33 = vector.shape_cast %32 : vector<1x8x8xf32> to vector<8x8xf32>
    %34 = vector.extract_strided_slice %0 {offsets = [0, 24], sizes = [8, 640], strides = [1, 1]} : vector<8x768xf32> to vector<8x640xf32>
    %cst_22 = arith.constant dense<0.000000e+00> : vector<8x640xf32>
    %35 = tpu.matmul %33, %34, %cst_22 {dimension_numbers = #tpu.dot_dimension_numbers<[1], [0], [0], [1], [0, 0, 1, 1], [], []>} : vector<8x8xf32>, vector<8x640xf32>, vector<8x640xf32> -> vector<8x640xf32>
    %36 = arith.addf %31, %35 : vector<8x640xf32>
    %c7 = arith.constant 7 : index
    %c0_23 = arith.constant 0 : index
    %c0_24 = arith.constant 0 : index
    %37 = vector.load %arg1[%c7, %c0_23, %c0_24] : memref<25x8x8xf32, #tpu.memory_space<vmem>>, vector<1x8x8xf32>
    %38 = vector.shape_cast %37 : vector<1x8x8xf32> to vector<8x8xf32>
    %39 = vector.extract_strided_slice %0 {offsets = [0, 25], sizes = [8, 640], strides = [1, 1]} : vector<8x768xf32> to vector<8x640xf32>
    %cst_25 = arith.constant dense<0.000000e+00> : vector<8x640xf32>
    %40 = tpu.matmul %38, %39, %cst_25 {dimension_numbers = #tpu.dot_dimension_numbers<[1], [0], [0], [1], [0, 0, 1, 1], [], []>} : vector<8x8xf32>, vector<8x640xf32>, vector<8x640xf32> -> vector<8x640xf32>
    %41 = arith.addf %36, %40 : vector<8x640xf32>
    %c8 = arith.constant 8 : index
    %c0_26 = arith.constant 0 : index
    %c0_27 = arith.constant 0 : index
    %42 = vector.load %arg1[%c8, %c0_26, %c0_27] : memref<25x8x8xf32, #tpu.memory_space<vmem>>, vector<1x8x8xf32>
    %43 = vector.shape_cast %42 : vector<1x8x8xf32> to vector<8x8xf32>
    %44 = vector.extract_strided_slice %0 {offsets = [0, 26], sizes = [8, 640], strides = [1, 1]} : vector<8x768xf32> to vector<8x640xf32>
    %cst_28 = arith.constant dense<0.000000e+00> : vector<8x640xf32>
    %45 = tpu.matmul %43, %44, %cst_28 {dimension_numbers = #tpu.dot_dimension_numbers<[1], [0], [0], [1], [0, 0, 1, 1], [], []>} : vector<8x8xf32>, vector<8x640xf32>, vector<8x640xf32> -> vector<8x640xf32>
    %46 = arith.addf %41, %45 : vector<8x640xf32>
    %c9 = arith.constant 9 : index
    %c0_29 = arith.constant 0 : index
    %c0_30 = arith.constant 0 : index
    %47 = vector.load %arg1[%c9, %c0_29, %c0_30] : memref<25x8x8xf32, #tpu.memory_space<vmem>>, vector<1x8x8xf32>
    %48 = vector.shape_cast %47 : vector<1x8x8xf32> to vector<8x8xf32>
    %49 = vector.extract_strided_slice %0 {offsets = [0, 27], sizes = [8, 640], strides = [1, 1]} : vector<8x768xf32> to vector<8x640xf32>
    %cst_31 = arith.constant dense<0.000000e+00> : vector<8x640xf32>
    %50 = tpu.matmul %48, %49, %cst_31 {dimension_numbers = #tpu.dot_dimension_numbers<[1], [0], [0], [1], [0, 0, 1, 1], [], []>} : vector<8x8xf32>, vector<8x640xf32>, vector<8x640xf32> -> vector<8x640xf32>
    %51 = arith.addf %46, %50 : vector<8x640xf32>
    %c10 = arith.constant 10 : index
    %c0_32 = arith.constant 0 : index
    %c0_33 = arith.constant 0 : index
    %52 = vector.load %arg1[%c10, %c0_32, %c0_33] : memref<25x8x8xf32, #tpu.memory_space<vmem>>, vector<1x8x8xf32>
    %53 = vector.shape_cast %52 : vector<1x8x8xf32> to vector<8x8xf32>
    %54 = vector.extract_strided_slice %0 {offsets = [0, 46], sizes = [8, 640], strides = [1, 1]} : vector<8x768xf32> to vector<8x640xf32>
    %cst_34 = arith.constant dense<0.000000e+00> : vector<8x640xf32>
    %55 = tpu.matmul %53, %54, %cst_34 {dimension_numbers = #tpu.dot_dimension_numbers<[1], [0], [0], [1], [0, 0, 1, 1], [], []>} : vector<8x8xf32>, vector<8x640xf32>, vector<8x640xf32> -> vector<8x640xf32>
    %56 = arith.addf %51, %55 : vector<8x640xf32>
    %c11 = arith.constant 11 : index
    %c0_35 = arith.constant 0 : index
    %c0_36 = arith.constant 0 : index
    %57 = vector.load %arg1[%c11, %c0_35, %c0_36] : memref<25x8x8xf32, #tpu.memory_space<vmem>>, vector<1x8x8xf32>
    %58 = vector.shape_cast %57 : vector<1x8x8xf32> to vector<8x8xf32>
    %59 = vector.extract_strided_slice %0 {offsets = [0, 47], sizes = [8, 640], strides = [1, 1]} : vector<8x768xf32> to vector<8x640xf32>
    %cst_37 = arith.constant dense<0.000000e+00> : vector<8x640xf32>
    %60 = tpu.matmul %58, %59, %cst_37 {dimension_numbers = #tpu.dot_dimension_numbers<[1], [0], [0], [1], [0, 0, 1, 1], [], []>} : vector<8x8xf32>, vector<8x640xf32>, vector<8x640xf32> -> vector<8x640xf32>
    %61 = arith.addf %56, %60 : vector<8x640xf32>
    %c12 = arith.constant 12 : index
    %c0_38 = arith.constant 0 : index
    %c0_39 = arith.constant 0 : index
    %62 = vector.load %arg1[%c12, %c0_38, %c0_39] : memref<25x8x8xf32, #tpu.memory_space<vmem>>, vector<1x8x8xf32>
    %63 = vector.shape_cast %62 : vector<1x8x8xf32> to vector<8x8xf32>
    %64 = vector.extract_strided_slice %0 {offsets = [0, 48], sizes = [8, 640], strides = [1, 1]} : vector<8x768xf32> to vector<8x640xf32>
    %cst_40 = arith.constant dense<0.000000e+00> : vector<8x640xf32>
    %65 = tpu.matmul %63, %64, %cst_40 {dimension_numbers = #tpu.dot_dimension_numbers<[1], [0], [0], [1], [0, 0, 1, 1], [], []>} : vector<8x8xf32>, vector<8x640xf32>, vector<8x640xf32> -> vector<8x640xf32>
    %66 = arith.addf %61, %65 : vector<8x640xf32>
    %c13 = arith.constant 13 : index
    %c0_41 = arith.constant 0 : index
    %c0_42 = arith.constant 0 : index
    %67 = vector.load %arg1[%c13, %c0_41, %c0_42] : memref<25x8x8xf32, #tpu.memory_space<vmem>>, vector<1x8x8xf32>
    %68 = vector.shape_cast %67 : vector<1x8x8xf32> to vector<8x8xf32>
    %69 = vector.extract_strided_slice %0 {offsets = [0, 49], sizes = [8, 640], strides = [1, 1]} : vector<8x768xf32> to vector<8x640xf32>
    %cst_43 = arith.constant dense<0.000000e+00> : vector<8x640xf32>
    %70 = tpu.matmul %68, %69, %cst_43 {dimension_numbers = #tpu.dot_dimension_numbers<[1], [0], [0], [1], [0, 0, 1, 1], [], []>} : vector<8x8xf32>, vector<8x640xf32>, vector<8x640xf32> -> vector<8x640xf32>
    %71 = arith.addf %66, %70 : vector<8x640xf32>
    %c14 = arith.constant 14 : index
    %c0_44 = arith.constant 0 : index
    %c0_45 = arith.constant 0 : index
    %72 = vector.load %arg1[%c14, %c0_44, %c0_45] : memref<25x8x8xf32, #tpu.memory_space<vmem>>, vector<1x8x8xf32>
    %73 = vector.shape_cast %72 : vector<1x8x8xf32> to vector<8x8xf32>
    %74 = vector.extract_strided_slice %0 {offsets = [0, 50], sizes = [8, 640], strides = [1, 1]} : vector<8x768xf32> to vector<8x640xf32>
    %cst_46 = arith.constant dense<0.000000e+00> : vector<8x640xf32>
    %75 = tpu.matmul %73, %74, %cst_46 {dimension_numbers = #tpu.dot_dimension_numbers<[1], [0], [0], [1], [0, 0, 1, 1], [], []>} : vector<8x8xf32>, vector<8x640xf32>, vector<8x640xf32> -> vector<8x640xf32>
    %76 = arith.addf %71, %75 : vector<8x640xf32>
    %c15 = arith.constant 15 : index
    %c0_47 = arith.constant 0 : index
    %c0_48 = arith.constant 0 : index
    %77 = vector.load %arg1[%c15, %c0_47, %c0_48] : memref<25x8x8xf32, #tpu.memory_space<vmem>>, vector<1x8x8xf32>
    %78 = vector.shape_cast %77 : vector<1x8x8xf32> to vector<8x8xf32>
    %79 = vector.extract_strided_slice %0 {offsets = [0, 69], sizes = [8, 640], strides = [1, 1]} : vector<8x768xf32> to vector<8x640xf32>
    %cst_49 = arith.constant dense<0.000000e+00> : vector<8x640xf32>
    %80 = tpu.matmul %78, %79, %cst_49 {dimension_numbers = #tpu.dot_dimension_numbers<[1], [0], [0], [1], [0, 0, 1, 1], [], []>} : vector<8x8xf32>, vector<8x640xf32>, vector<8x640xf32> -> vector<8x640xf32>
    %81 = arith.addf %76, %80 : vector<8x640xf32>
    %c16 = arith.constant 16 : index
    %c0_50 = arith.constant 0 : index
    %c0_51 = arith.constant 0 : index
    %82 = vector.load %arg1[%c16, %c0_50, %c0_51] : memref<25x8x8xf32, #tpu.memory_space<vmem>>, vector<1x8x8xf32>
    %83 = vector.shape_cast %82 : vector<1x8x8xf32> to vector<8x8xf32>
    %84 = vector.extract_strided_slice %0 {offsets = [0, 70], sizes = [8, 640], strides = [1, 1]} : vector<8x768xf32> to vector<8x640xf32>
    %cst_52 = arith.constant dense<0.000000e+00> : vector<8x640xf32>
    %85 = tpu.matmul %83, %84, %cst_52 {dimension_numbers = #tpu.dot_dimension_numbers<[1], [0], [0], [1], [0, 0, 1, 1], [], []>} : vector<8x8xf32>, vector<8x640xf32>, vector<8x640xf32> -> vector<8x640xf32>
    %86 = arith.addf %81, %85 : vector<8x640xf32>
    %c17 = arith.constant 17 : index
    %c0_53 = arith.constant 0 : index
    %c0_54 = arith.constant 0 : index
    %87 = vector.load %arg1[%c17, %c0_53, %c0_54] : memref<25x8x8xf32, #tpu.memory_space<vmem>>, vector<1x8x8xf32>
    %88 = vector.shape_cast %87 : vector<1x8x8xf32> to vector<8x8xf32>
    %89 = vector.extract_strided_slice %0 {offsets = [0, 71], sizes = [8, 640], strides = [1, 1]} : vector<8x768xf32> to vector<8x640xf32>
    %cst_55 = arith.constant dense<0.000000e+00> : vector<8x640xf32>
    %90 = tpu.matmul %88, %89, %cst_55 {dimension_numbers = #tpu.dot_dimension_numbers<[1], [0], [0], [1], [0, 0, 1, 1], [], []>} : vector<8x8xf32>, vector<8x640xf32>, vector<8x640xf32> -> vector<8x640xf32>
    %91 = arith.addf %86, %90 : vector<8x640xf32>
    %c18 = arith.constant 18 : index
    %c0_56 = arith.constant 0 : index
    %c0_57 = arith.constant 0 : index
    %92 = vector.load %arg1[%c18, %c0_56, %c0_57] : memref<25x8x8xf32, #tpu.memory_space<vmem>>, vector<1x8x8xf32>
    %93 = vector.shape_cast %92 : vector<1x8x8xf32> to vector<8x8xf32>
    %94 = vector.extract_strided_slice %0 {offsets = [0, 72], sizes = [8, 640], strides = [1, 1]} : vector<8x768xf32> to vector<8x640xf32>
    %cst_58 = arith.constant dense<0.000000e+00> : vector<8x640xf32>
    %95 = tpu.matmul %93, %94, %cst_58 {dimension_numbers = #tpu.dot_dimension_numbers<[1], [0], [0], [1], [0, 0, 1, 1], [], []>} : vector<8x8xf32>, vector<8x640xf32>, vector<8x640xf32> -> vector<8x640xf32>
    %96 = arith.addf %91, %95 : vector<8x640xf32>
    %c19 = arith.constant 19 : index
    %c0_59 = arith.constant 0 : index
    %c0_60 = arith.constant 0 : index
    %97 = vector.load %arg1[%c19, %c0_59, %c0_60] : memref<25x8x8xf32, #tpu.memory_space<vmem>>, vector<1x8x8xf32>
    %98 = vector.shape_cast %97 : vector<1x8x8xf32> to vector<8x8xf32>
    %99 = vector.extract_strided_slice %0 {offsets = [0, 73], sizes = [8, 640], strides = [1, 1]} : vector<8x768xf32> to vector<8x640xf32>
    %cst_61 = arith.constant dense<0.000000e+00> : vector<8x640xf32>
    %100 = tpu.matmul %98, %99, %cst_61 {dimension_numbers = #tpu.dot_dimension_numbers<[1], [0], [0], [1], [0, 0, 1, 1], [], []>} : vector<8x8xf32>, vector<8x640xf32>, vector<8x640xf32> -> vector<8x640xf32>
    %101 = arith.addf %96, %100 : vector<8x640xf32>
    %c20 = arith.constant 20 : index
    %c0_62 = arith.constant 0 : index
    %c0_63 = arith.constant 0 : index
    %102 = vector.load %arg1[%c20, %c0_62, %c0_63] : memref<25x8x8xf32, #tpu.memory_space<vmem>>, vector<1x8x8xf32>
    %103 = vector.shape_cast %102 : vector<1x8x8xf32> to vector<8x8xf32>
    %104 = vector.extract_strided_slice %0 {offsets = [0, 92], sizes = [8, 640], strides = [1, 1]} : vector<8x768xf32> to vector<8x640xf32>
    %cst_64 = arith.constant dense<0.000000e+00> : vector<8x640xf32>
    %105 = tpu.matmul %103, %104, %cst_64 {dimension_numbers = #tpu.dot_dimension_numbers<[1], [0], [0], [1], [0, 0, 1, 1], [], []>} : vector<8x8xf32>, vector<8x640xf32>, vector<8x640xf32> -> vector<8x640xf32>
    %106 = arith.addf %101, %105 : vector<8x640xf32>
    %c21 = arith.constant 21 : index
    %c0_65 = arith.constant 0 : index
    %c0_66 = arith.constant 0 : index
    %107 = vector.load %arg1[%c21, %c0_65, %c0_66] : memref<25x8x8xf32, #tpu.memory_space<vmem>>, vector<1x8x8xf32>
    %108 = vector.shape_cast %107 : vector<1x8x8xf32> to vector<8x8xf32>
    %109 = vector.extract_strided_slice %0 {offsets = [0, 93], sizes = [8, 640], strides = [1, 1]} : vector<8x768xf32> to vector<8x640xf32>
    %cst_67 = arith.constant dense<0.000000e+00> : vector<8x640xf32>
    %110 = tpu.matmul %108, %109, %cst_67 {dimension_numbers = #tpu.dot_dimension_numbers<[1], [0], [0], [1], [0, 0, 1, 1], [], []>} : vector<8x8xf32>, vector<8x640xf32>, vector<8x640xf32> -> vector<8x640xf32>
    %111 = arith.addf %106, %110 : vector<8x640xf32>
    %c22 = arith.constant 22 : index
    %c0_68 = arith.constant 0 : index
    %c0_69 = arith.constant 0 : index
    %112 = vector.load %arg1[%c22, %c0_68, %c0_69] : memref<25x8x8xf32, #tpu.memory_space<vmem>>, vector<1x8x8xf32>
    %113 = vector.shape_cast %112 : vector<1x8x8xf32> to vector<8x8xf32>
    %114 = vector.extract_strided_slice %0 {offsets = [0, 94], sizes = [8, 640], strides = [1, 1]} : vector<8x768xf32> to vector<8x640xf32>
    %cst_70 = arith.constant dense<0.000000e+00> : vector<8x640xf32>
    %115 = tpu.matmul %113, %114, %cst_70 {dimension_numbers = #tpu.dot_dimension_numbers<[1], [0], [0], [1], [0, 0, 1, 1], [], []>} : vector<8x8xf32>, vector<8x640xf32>, vector<8x640xf32> -> vector<8x640xf32>
    %116 = arith.addf %111, %115 : vector<8x640xf32>
    %c23 = arith.constant 23 : index
    %c0_71 = arith.constant 0 : index
    %c0_72 = arith.constant 0 : index
    %117 = vector.load %arg1[%c23, %c0_71, %c0_72] : memref<25x8x8xf32, #tpu.memory_space<vmem>>, vector<1x8x8xf32>
    %118 = vector.shape_cast %117 : vector<1x8x8xf32> to vector<8x8xf32>
    %119 = vector.extract_strided_slice %0 {offsets = [0, 95], sizes = [8, 640], strides = [1, 1]} : vector<8x768xf32> to vector<8x640xf32>
    %cst_73 = arith.constant dense<0.000000e+00> : vector<8x640xf32>
    %120 = tpu.matmul %118, %119, %cst_73 {dimension_numbers = #tpu.dot_dimension_numbers<[1], [0], [0], [1], [0, 0, 1, 1], [], []>} : vector<8x8xf32>, vector<8x640xf32>, vector<8x640xf32> -> vector<8x640xf32>
    %121 = arith.addf %116, %120 : vector<8x640xf32>
    %c24 = arith.constant 24 : index
    %c0_74 = arith.constant 0 : index
    %c0_75 = arith.constant 0 : index
    %122 = vector.load %arg1[%c24, %c0_74, %c0_75] : memref<25x8x8xf32, #tpu.memory_space<vmem>>, vector<1x8x8xf32>
    %123 = vector.shape_cast %122 : vector<1x8x8xf32> to vector<8x8xf32>
    %124 = vector.extract_strided_slice %0 {offsets = [0, 96], sizes = [8, 640], strides = [1, 1]} : vector<8x768xf32> to vector<8x640xf32>
    %cst_76 = arith.constant dense<0.000000e+00> : vector<8x640xf32>
    %125 = tpu.matmul %123, %124, %cst_76 {dimension_numbers = #tpu.dot_dimension_numbers<[1], [0], [0], [1], [0, 0, 1, 1], [], []>} : vector<8x8xf32>, vector<8x640xf32>, vector<8x640xf32> -> vector<8x640xf32>
    %126 = arith.addf %121, %125 : vector<8x640xf32>
    %c0_77 = arith.constant 0 : index
    %c0_78 = arith.constant 0 : index
    %127 = vector.load %arg2[%c0_77, %c0_78] : memref<8x1xf32, #tpu.memory_space<vmem>>, vector<8x1xf32>
    %128 = vector.broadcast %127 : vector<8x1xf32> to vector<8x640xf32>
    %129 = arith.addf %126, %128 : vector<8x640xf32>
    %cst_79 = arith.constant 5.000000e-01 : f32
    %130 = vector.broadcast %cst_79 : f32 to vector<8x640xf32>
    %131 = arith.addf %129, %130 : vector<8x640xf32>
    %c0_80 = arith.constant 0 : index
    %c0_81 = arith.constant 0 : index
    %132 = vector.load %arg5[%c0_80, %c0_81] : memref<1x640xf32, #tpu.memory_space<vmem>>, vector<1x640xf32>
    %133 = vector.broadcast %132 : vector<1x640xf32> to vector<8x640xf32>
    %134 = arith.mulf %131, %133 : vector<8x640xf32>
    %cst_82 = arith.constant 0.000000e+00 : f32
    %135 = vector.broadcast %cst_82 : f32 to vector<8x512xf32>
    %c0_83 = arith.constant 0 : index
    %c0_84 = arith.constant 0 : index
    %c0_85 = arith.constant 0 : index
    %136 = vector.load %arg3[%c0_83, %c0_84, %c0_85] : memref<9x8x8xf32, #tpu.memory_space<vmem>>, vector<1x8x8xf32>
    %137 = vector.shape_cast %136 : vector<1x8x8xf32> to vector<8x8xf32>
    %138 = vector.extract_strided_slice %134 {offsets = [0, 0], sizes = [8, 512], strides = [1, 1]} : vector<8x640xf32> to vector<8x512xf32>
    %cst_86 = arith.constant dense<0.000000e+00> : vector<8x512xf32>
    %139 = tpu.matmul %137, %138, %cst_86 {dimension_numbers = #tpu.dot_dimension_numbers<[1], [0], [0], [1], [0, 0, 1, 1], [], []>} : vector<8x8xf32>, vector<8x512xf32>, vector<8x512xf32> -> vector<8x512xf32>
    %140 = arith.addf %135, %139 : vector<8x512xf32>
    %c1_87 = arith.constant 1 : index
    %c0_88 = arith.constant 0 : index
    %c0_89 = arith.constant 0 : index
    %141 = vector.load %arg3[%c1_87, %c0_88, %c0_89] : memref<9x8x8xf32, #tpu.memory_space<vmem>>, vector<1x8x8xf32>
    %142 = vector.shape_cast %141 : vector<1x8x8xf32> to vector<8x8xf32>
    %143 = vector.extract_strided_slice %134 {offsets = [0, 1], sizes = [8, 512], strides = [1, 1]} : vector<8x640xf32> to vector<8x512xf32>
    %cst_90 = arith.constant dense<0.000000e+00> : vector<8x512xf32>
    %144 = tpu.matmul %142, %143, %cst_90 {dimension_numbers = #tpu.dot_dimension_numbers<[1], [0], [0], [1], [0, 0, 1, 1], [], []>} : vector<8x8xf32>, vector<8x512xf32>, vector<8x512xf32> -> vector<8x512xf32>
    %145 = arith.addf %140, %144 : vector<8x512xf32>
    %c2_91 = arith.constant 2 : index
    %c0_92 = arith.constant 0 : index
    %c0_93 = arith.constant 0 : index
    %146 = vector.load %arg3[%c2_91, %c0_92, %c0_93] : memref<9x8x8xf32, #tpu.memory_space<vmem>>, vector<1x8x8xf32>
    %147 = vector.shape_cast %146 : vector<1x8x8xf32> to vector<8x8xf32>
    %148 = vector.extract_strided_slice %134 {offsets = [0, 2], sizes = [8, 512], strides = [1, 1]} : vector<8x640xf32> to vector<8x512xf32>
    %cst_94 = arith.constant dense<0.000000e+00> : vector<8x512xf32>
    %149 = tpu.matmul %147, %148, %cst_94 {dimension_numbers = #tpu.dot_dimension_numbers<[1], [0], [0], [1], [0, 0, 1, 1], [], []>} : vector<8x8xf32>, vector<8x512xf32>, vector<8x512xf32> -> vector<8x512xf32>
    %150 = arith.addf %145, %149 : vector<8x512xf32>
    %c3_95 = arith.constant 3 : index
    %c0_96 = arith.constant 0 : index
    %c0_97 = arith.constant 0 : index
    %151 = vector.load %arg3[%c3_95, %c0_96, %c0_97] : memref<9x8x8xf32, #tpu.memory_space<vmem>>, vector<1x8x8xf32>
    %152 = vector.shape_cast %151 : vector<1x8x8xf32> to vector<8x8xf32>
    %153 = vector.extract_strided_slice %134 {offsets = [0, 23], sizes = [8, 512], strides = [1, 1]} : vector<8x640xf32> to vector<8x512xf32>
    %cst_98 = arith.constant dense<0.000000e+00> : vector<8x512xf32>
    %154 = tpu.matmul %152, %153, %cst_98 {dimension_numbers = #tpu.dot_dimension_numbers<[1], [0], [0], [1], [0, 0, 1, 1], [], []>} : vector<8x8xf32>, vector<8x512xf32>, vector<8x512xf32> -> vector<8x512xf32>
    %155 = arith.addf %150, %154 : vector<8x512xf32>
    %c4_99 = arith.constant 4 : index
    %c0_100 = arith.constant 0 : index
    %c0_101 = arith.constant 0 : index
    %156 = vector.load %arg3[%c4_99, %c0_100, %c0_101] : memref<9x8x8xf32, #tpu.memory_space<vmem>>, vector<1x8x8xf32>
    %157 = vector.shape_cast %156 : vector<1x8x8xf32> to vector<8x8xf32>
    %158 = vector.extract_strided_slice %134 {offsets = [0, 24], sizes = [8, 512], strides = [1, 1]} : vector<8x640xf32> to vector<8x512xf32>
    %cst_102 = arith.constant dense<0.000000e+00> : vector<8x512xf32>
    %159 = tpu.matmul %157, %158, %cst_102 {dimension_numbers = #tpu.dot_dimension_numbers<[1], [0], [0], [1], [0, 0, 1, 1], [], []>} : vector<8x8xf32>, vector<8x512xf32>, vector<8x512xf32> -> vector<8x512xf32>
    %160 = arith.addf %155, %159 : vector<8x512xf32>
    %c5_103 = arith.constant 5 : index
    %c0_104 = arith.constant 0 : index
    %c0_105 = arith.constant 0 : index
    %161 = vector.load %arg3[%c5_103, %c0_104, %c0_105] : memref<9x8x8xf32, #tpu.memory_space<vmem>>, vector<1x8x8xf32>
    %162 = vector.shape_cast %161 : vector<1x8x8xf32> to vector<8x8xf32>
    %163 = vector.extract_strided_slice %134 {offsets = [0, 25], sizes = [8, 512], strides = [1, 1]} : vector<8x640xf32> to vector<8x512xf32>
    %cst_106 = arith.constant dense<0.000000e+00> : vector<8x512xf32>
    %164 = tpu.matmul %162, %163, %cst_106 {dimension_numbers = #tpu.dot_dimension_numbers<[1], [0], [0], [1], [0, 0, 1, 1], [], []>} : vector<8x8xf32>, vector<8x512xf32>, vector<8x512xf32> -> vector<8x512xf32>
    %165 = arith.addf %160, %164 : vector<8x512xf32>
    %c6_107 = arith.constant 6 : index
    %c0_108 = arith.constant 0 : index
    %c0_109 = arith.constant 0 : index
    %166 = vector.load %arg3[%c6_107, %c0_108, %c0_109] : memref<9x8x8xf32, #tpu.memory_space<vmem>>, vector<1x8x8xf32>
    %167 = vector.shape_cast %166 : vector<1x8x8xf32> to vector<8x8xf32>
    %168 = vector.extract_strided_slice %134 {offsets = [0, 46], sizes = [8, 512], strides = [1, 1]} : vector<8x640xf32> to vector<8x512xf32>
    %cst_110 = arith.constant dense<0.000000e+00> : vector<8x512xf32>
    %169 = tpu.matmul %167, %168, %cst_110 {dimension_numbers = #tpu.dot_dimension_numbers<[1], [0], [0], [1], [0, 0, 1, 1], [], []>} : vector<8x8xf32>, vector<8x512xf32>, vector<8x512xf32> -> vector<8x512xf32>
    %170 = arith.addf %165, %169 : vector<8x512xf32>
    %c7_111 = arith.constant 7 : index
    %c0_112 = arith.constant 0 : index
    %c0_113 = arith.constant 0 : index
    %171 = vector.load %arg3[%c7_111, %c0_112, %c0_113] : memref<9x8x8xf32, #tpu.memory_space<vmem>>, vector<1x8x8xf32>
    %172 = vector.shape_cast %171 : vector<1x8x8xf32> to vector<8x8xf32>
    %173 = vector.extract_strided_slice %134 {offsets = [0, 47], sizes = [8, 512], strides = [1, 1]} : vector<8x640xf32> to vector<8x512xf32>
    %cst_114 = arith.constant dense<0.000000e+00> : vector<8x512xf32>
    %174 = tpu.matmul %172, %173, %cst_114 {dimension_numbers = #tpu.dot_dimension_numbers<[1], [0], [0], [1], [0, 0, 1, 1], [], []>} : vector<8x8xf32>, vector<8x512xf32>, vector<8x512xf32> -> vector<8x512xf32>
    %175 = arith.addf %170, %174 : vector<8x512xf32>
    %c8_115 = arith.constant 8 : index
    %c0_116 = arith.constant 0 : index
    %c0_117 = arith.constant 0 : index
    %176 = vector.load %arg3[%c8_115, %c0_116, %c0_117] : memref<9x8x8xf32, #tpu.memory_space<vmem>>, vector<1x8x8xf32>
    %177 = vector.shape_cast %176 : vector<1x8x8xf32> to vector<8x8xf32>
    %178 = vector.extract_strided_slice %134 {offsets = [0, 48], sizes = [8, 512], strides = [1, 1]} : vector<8x640xf32> to vector<8x512xf32>
    %cst_118 = arith.constant dense<0.000000e+00> : vector<8x512xf32>
    %179 = tpu.matmul %177, %178, %cst_118 {dimension_numbers = #tpu.dot_dimension_numbers<[1], [0], [0], [1], [0, 0, 1, 1], [], []>} : vector<8x8xf32>, vector<8x512xf32>, vector<8x512xf32> -> vector<8x512xf32>
    %180 = arith.addf %175, %179 : vector<8x512xf32>
    %c0_119 = arith.constant 0 : index
    %c0_120 = arith.constant 0 : index
    %181 = vector.load %arg4[%c0_119, %c0_120] : memref<8x1xf32, #tpu.memory_space<vmem>>, vector<8x1xf32>
    %182 = vector.broadcast %181 : vector<8x1xf32> to vector<8x512xf32>
    %183 = arith.addf %180, %182 : vector<8x512xf32>
    %c0_121 = arith.constant 0 : index
    %c0_122 = arith.constant 0 : index
    %184 = vector.load %arg6[%c0_121, %c0_122] : memref<8x512xf32, #tpu.memory_space<vmem>>, vector<8x512xf32>
    tpu.vector_store %arg6[%c0_121, %c0_122], %183 {strides = array<i32>} : memref<8x512xf32, #tpu.memory_space<vmem>>, vector<8x512xf32>,
    return
  }
}

</mosaic_0001>

<bundles_post_ra>
// kernel: model_forward.1
= control target key start
LH: loop header
LB: loop body
LE: loop exit
PB: predicated region body
PF: predicated region fallthrough
CT: control target
= control target key end

     0   :  { %v8026_v2 = vmov 0.0   ;;  %s8027_s25 = smov 127   ;;  %s8028_s10 = smov 126   ;;  %vm50_vm0 = vcmask 1039360   ;;  %vm61_vm1 = vcmask 64512   ;;  %vm8038_vm2 = vmmov 0   ;;  %s8979_s0 = inlined_call_operand.vmem [shape: f32[8,768], index: 0, kind: input, shape index: {}]   ;;  %s8980_s1 = inlined_call_operand.vmem [shape: f32[25,8,8], index: 1, kind: input, shape index: {}]   ;;  %s8981_s2 = inlined_call_operand.vmem [shape: f32[8,1], index: 2, kind: input, shape index: {}]   ;;  %s8982_s5 = inlined_call_operand.vmem [shape: f32[1,640], index: 5, kind: input, shape index: {}]   ;;  %s8983_s4 = inlined_call_operand.vmem [shape: f32[8,1], index: 4, kind: input, shape index: {}]   ;;  %s8984_s3 = inlined_call_operand.vmem [shape: f32[9,8,8], index: 3, kind: input, shape index: {}]   ;;  %s8985_s6 = inlined_call_operand.vmem [shape: f32[8,512], index: 6, kind: output, shape index: {}]  }
   0x1   :  { %v8091_v0 = vld [vmem:[%s8979_s0 + $0x8] sm:$0xff]  ;;  %v8096_v1 = vld [vmem:[%s8979_s0] sm:$0xff]  ;;  %129 = vmatprep.mubr.f32.mxu0 %v8026_v2  ;;  %200 = vmatprep.mubr.f32.mxu1 %v8026_v2  ;;  %v8107_v3 = vld [vmem:[%s8979_s0 + $0x10] sm:$0xff]  ;;  %s8029_s11 = smov 125   ;;  %s8030_s12 = smov 124   ;;  %vm506_vm3 = vcmask 1031168  }
   0x2   :  { %40 = vrot.lane.b32.xlu0 %v8091_v0, %s8027_s25  ;;  %38 = vrot.lane.b32.xlu1 %v8096_v1, %s8027_s25  ;;  %v8112_v4 = vld [vmem:[%s8979_s0 + $0x18] sm:$0xff]  ;;  %v8121_v5 = vld [vmem:[%s8979_s0 + $0x20] sm:$0xff]  ;;  %s8031_s13 = smov 105   ;;  %s8032_s14 = smov 104   ;;  %vm751_vm4 = vcmask 1022976   ;;  %vm996_vm5 = vcmask 1014784  }
   0x3   :  { %v8126_v6 = vld [vmem:[%s8979_s0 + $0x28] sm:$0xff]  ;;  %s8033_s15 = smov 103   ;;  %s8034_s16 = smov 102   ;;  %v29_v22 = vld [vmem:[%s8980_s1] sm:$0xff]  ;;  %v7699_v28 = vld [vmem:[%s8980_s1 + $0x10] sm:$0xff]  ;;  %vm1241_vm6 = vcmask 859136  }
   0x4   :  { %s8035_s17 = smov 101   ;;  %s8036_s18 = smov 82   ;;  %v7692_v12 = vld [vmem:[%s8980_s1 + $0x8] sm:$0xff]  ;;  %v7703_v38 = vld [vmem:[%s8980_s1 + $0x18] sm:$0xff]  ;;  %v7707_v50 = vld [vmem:[%s8980_s1 + $0x20] sm:$0xff]  ;;  %vm1486_vm7 = vcmask 850944  }
   0x5   :  { %s8037_s21 = smov 81   ;;  %s8039_s24 = smov 80   ;;  %v7711_v62 = vld [vmem:[%s8980_s1 + $0x28] sm:$0xff]  ;;  %vm1731_vm8 = vcmask 842752   ;;  %vm1976_vm9 = vcmask 834560   ;;  %vm2221_vm10 = vcmask 826368  }
   0x6   :  { %42 = vrot.lane.b32.xlu0 %v8107_v3, %s8027_s25  ;;  %44 = vrot.lane.b32.xlu1 %v8112_v4, %s8027_s25  ;;  %s8040_s28 = smov 79   ;;  %s8041_s9 = smov 78   ;;  %vm2466_vm11 = vcmask 670720   ;;  %vm2711_vm12 = vcmask 662528   ;;  %vm2956_vm13 = vcmask 654336   ;;  %vm3201_vm14 = vcmask 646144  }
   0x7   :  { %s8043_s20 = smov 58   ;;  %s8044_s26 = smov 57   ;;  %vm3446_vm15 = vcmask 637952  }
   0x8   :  { %s8045_s29 = smov 56   ;;  %s8046_s8 = smov 55  }
   0x9   :  { %s8048_s19 = smov 35   ;;  %s8049_s23 = smov 34  }
   0xa   :  { %46 = vrot.lane.b32.xlu0 %v8121_v5, %s8027_s25  ;;  %48 = vrot.lane.b32.xlu1 %v8126_v6, %s8027_s25 }
   0xe   :  { %496 = vrot.lane.b32.xlu0 %v8091_v0, %s8028_s10  ;;  %498 = vrot.lane.b32.xlu1 %v8107_v3, %s8028_s10 }
  0x12   :  { %494 = vrot.lane.b32.xlu0 %v8096_v1, %s8028_s10  ;;  %500 = vrot.lane.b32.xlu1 %v8112_v4, %s8028_s10 }
  0x16   :  { %502 = vrot.lane.b32.xlu0 %v8121_v5, %s8028_s10  ;;  %504 = vrot.lane.b32.xlu1 %v8126_v6, %s8028_s10 }
  0x1a   :  { %741 = vrot.lane.b32.xlu0 %v8091_v0, %s8029_s11  ;;  %743 = vrot.lane.b32.xlu1 %v8107_v3, %s8029_s11 }
  0x1e   :  { %739 = vrot.lane.b32.xlu0 %v8096_v1, %s8029_s11  ;;  %745 = vrot.lane.b32.xlu1 %v8112_v4, %s8029_s11 }
  0x22   :  { %747 = vrot.lane.b32.xlu0 %v8121_v5, %s8029_s11  ;;  %749 = vrot.lane.b32.xlu1 %v8126_v6, %s8029_s11 }
  0x26   :  { %986 = vrot.lane.b32.xlu0 %v8091_v0, %s8030_s12  ;;  %988 = vrot.lane.b32.xlu1 %v8107_v3, %s8030_s12 }
  0x2a   :  { %984 = vrot.lane.b32.xlu0 %v8096_v1, %s8030_s12  ;;  %990 = vrot.lane.b32.xlu1 %v8112_v4, %s8030_s12 }
  0x2e   :  { %992 = vrot.lane.b32.xlu0 %v8121_v5, %s8030_s12  ;;  %994 = vrot.lane.b32.xlu1 %v8126_v6, %s8030_s12  ;;  %s8047_s12 = smov 36  }
  0x32   :  { %1231 = vrot.lane.b32.xlu0 %v8091_v0, %s8031_s13  ;;  %1233 = vrot.lane.b32.xlu1 %v8107_v3, %s8031_s13 }
  0x36   :  { %1229 = vrot.lane.b32.xlu0 %v8096_v1, %s8031_s13  ;;  %1235 = vrot.lane.b32.xlu1 %v8112_v4, %s8031_s13 }
  0x3a   :  { %1237 = vrot.lane.b32.xlu0 %v8121_v5, %s8031_s13  ;;  %1239 = vrot.lane.b32.xlu1 %v8126_v6, %s8031_s13 }
  0x3e   :  { %1476 = vrot.lane.b32.xlu0 %v8091_v0, %s8032_s14  ;;  %1478 = vrot.lane.b32.xlu1 %v8107_v3, %s8032_s14 }
  0x42   :  { %1474 = vrot.lane.b32.xlu0 %v8096_v1, %s8032_s14  ;;  %1480 = vrot.lane.b32.xlu1 %v8112_v4, %s8032_s14 }
  0x46   :  { %1482 = vrot.lane.b32.xlu0 %v8121_v5, %s8032_s14  ;;  %1484 = vrot.lane.b32.xlu1 %v8126_v6, %s8032_s14 }
  0x4a   :  { %1721 = vrot.lane.b32.xlu0 %v8091_v0, %s8033_s15  ;;  %1723 = vrot.lane.b32.xlu1 %v8107_v3, %s8033_s15 }
  0x4e   :  { %1719 = vrot.lane.b32.xlu0 %v8096_v1, %s8033_s15  ;;  %1725 = vrot.lane.b32.xlu1 %v8112_v4, %s8033_s15 }
  0x52   :  { %1727 = vrot.lane.b32.xlu0 %v8121_v5, %s8033_s15  ;;  %1729 = vrot.lane.b32.xlu1 %v8126_v6, %s8033_s15 }
  0x56   :  { %1966 = vrot.lane.b32.xlu0 %v8091_v0, %s8034_s16  ;;  %1968 = vrot.lane.b32.xlu1 %v8107_v3, %s8034_s16 }
  0x5a   :  { %1964 = vrot.lane.b32.xlu0 %v8096_v1, %s8034_s16  ;;  %1970 = vrot.lane.b32.xlu1 %v8112_v4, %s8034_s16 }
  0x5e   :  { %1972 = vrot.lane.b32.xlu0 %v8121_v5, %s8034_s16  ;;  %1974 = vrot.lane.b32.xlu1 %v8126_v6, %s8034_s16  ;;  %s8042_s16 = smov 59  }
  0x62   :  { %2211 = vrot.lane.b32.xlu0 %v8091_v0, %s8035_s17  ;;  %2213 = vrot.lane.b32.xlu1 %v8107_v3, %s8035_s17 }
  0x66   :  { %2209 = vrot.lane.b32.xlu0 %v8096_v1, %s8035_s17  ;;  %2215 = vrot.lane.b32.xlu1 %v8112_v4, %s8035_s17 }
  0x6a   :  { %2217 = vrot.lane.b32.xlu0 %v8121_v5, %s8035_s17  ;;  %2219 = vrot.lane.b32.xlu1 %v8126_v6, %s8035_s17 }
  0x6e   :  { %2456 = vrot.lane.b32.xlu0 %v8091_v0, %s8036_s18  ;;  %2458 = vrot.lane.b32.xlu1 %v8107_v3, %s8036_s18 }
  0x72   :  { %2454 = vrot.lane.b32.xlu0 %v8096_v1, %s8036_s18  ;;  %2460 = vrot.lane.b32.xlu1 %v8112_v4, %s8036_s18 }
  0x74   :  { %v41_v7 = vpop.permute.xlu0 %40  ;;  %v39_v8 = vpop.permute.xlu1 %38 }
  0x75   :  { %v51_v13 = vsel %vm50_vm0, %v39_v8, %v41_v7 }
  0x76   :  { %2462 = vrot.lane.b32.xlu0 %v8121_v5, %s8036_s18  ;;  %2464 = vrot.lane.b32.xlu1 %v8126_v6, %s8036_s18 }
  0x78   :  { %v43_v9 = vpop.permute.xlu0 %42  ;;  %v45_v10 = vpop.permute.xlu1 %44 }
  0x79   :  { %v52_v11 = vsel %vm50_vm0, %v41_v7, %v43_v9  ;;  %v53_v18 = vsel %vm50_vm0, %v43_v9, %v45_v10 }
  0x7a   :  { %95 = vmatprep.subr.mxu0 %v52_v11  ;;  %2701 = vrot.lane.b32.xlu0 %v8091_v0, %s8037_s21 }
  0x7b   :  { %2703 = vrot.lane.b32.xlu1 %v8107_v3, %s8037_s21  ;;  %96 = vmatpush1.msra.mxu0 %v51_v13 }
  0x7c   :  { %v47_v14 = vpop.permute.xlu0 %46  ;;  %v49_v15 = vpop.permute.xlu1 %48  ;;  %7693 = vmatmul.mubr.msk.f32.vlgmr.msra.gmra.mxu0 %vm61_vm1, %v7692_v12  ;;  %7867 = vmatprep.subr.mxu0 %v8026_v2 }
  0x7d   :  { %v55_v16 = vsel %vm50_vm0, %v47_v14, %v49_v15  ;;  %v54_v17 = vsel %vm50_vm0, %v45_v10, %v47_v14  ;;  %7869 = vmatprep.mubr.msk.f32.mxu0 %vm8038_vm2, %v8026_v2 }
  0x7e   :  { %2699 = vrot.lane.b32.xlu0 %v8096_v1, %s8037_s21  ;;  %166 = vmatprep.subr.mxu1 %v54_v17  ;;  %v7715_v17 = vld [vmem:[%s8980_s1 + $0x30] sm:$0xff] }
  0x7f   :  { %2705 = vrot.lane.b32.xlu1 %v8112_v4, %s8037_s21  ;;  %7868 = vmatpush3.msra.mxu0 %v55_v16 }
  0x80   :  { %167 = vmatpush1.msra.mxu1 %v53_v18  ;;  %v497_v19 = vpop.permute.xlu0 %496  ;;  %381 = vmatprep.subr.mxu0 %v8112_v4  ;;  %v499_v20 = vpop.permute.xlu1 %498 }
  0x81   :  { %7870 = vmatmul.mubr.msk.f32.vlgmr.msra.gmra.mxu0 %vm61_vm1, %v7692_v12  ;;  %v508_v21 = vsel %vm506_vm3, %v497_v19, %v499_v20  ;;  %7694 = vmatmul.mubr.msk.f32.vlgmr.msra.gmra.mxu1 %vm61_vm1, %v7692_v12 }
  0x82   :  { %382 = vmatpush1.msra.mxu0 %v8107_v3  ;;  %2707 = vrot.lane.b32.xlu0 %v8121_v5, %s8037_s21 }
  0x83   :  { %2709 = vrot.lane.b32.xlu1 %v8126_v6, %s8037_s21  ;;  %550 = vmatprep.subr.mxu0 %v508_v21 }
  0x84   :  { %v495_v23 = vpop.permute.xlu0 %494  ;;  %v501_v24 = vpop.permute.xlu1 %500  ;;  %310 = vmatprep.subr.mxu1 %v8091_v0  ;;  %415 = vmatprep.mubr.f32.mxu0 %v8026_v2 }
  0x85   :  { %v507_v25 = vsel %vm506_vm3, %v495_v23, %v497_v19  ;;  %311 = vmatpush1.msra.mxu1 %v8096_v1  ;;  %344 = vmatprep.mubr.f32.mxu1 %v8026_v2  ;;  %v509_v33 = vsel %vm506_vm3, %v499_v20, %v501_v24 }
  0x86   :  { %2946 = vrot.lane.b32.xlu0 %v8091_v0, %s8039_s24  ;;  %7697 = vmatmul.mubr.msk.f32.vlgmr.msra.gmra.mxu0 %vm61_vm1, %v29_v22 }
  0x87   :  { %2948 = vrot.lane.b32.xlu1 %v8107_v3, %s8039_s24  ;;  %551 = vmatpush1.msra.mxu0 %v507_v25 }
  0x88   :  { %7696 = vmatmul.mubr.msk.f32.vlgmr.msra.gmra.mxu1 %vm61_vm1, %v29_v22  ;;  %v503_v26 = vpop.permute.xlu0 %502  ;;  %7872 = vmatprep.subr.mxu1 %v8026_v2  ;;  %v505_v27 = vpop.permute.xlu1 %504 }
  0x89   :  { %7873 = vmatpush3.msra.mxu1 %v8121_v5  ;;  %584 = vmatprep.mubr.f32.mxu0 %v8026_v2  ;;  %v510_v29 = vsel %vm506_vm3, %v501_v24, %v503_v26  ;;  %v511_v30 = vsel %vm506_vm3, %v503_v26, %v505_v27 }
  0x8a   :  { %7877 = vmatprep.subr.mxu0 %v8026_v2  ;;  %2944 = vrot.lane.b32.xlu0 %v8096_v1, %s8039_s24 }
  0x8b   :  { %2950 = vrot.lane.b32.xlu1 %v8112_v4, %s8039_s24  ;;  %7874 = vmatprep.mubr.msk.f32.mxu1 %vm8038_vm2, %v8026_v2 }
  0x8c   :  { %7700 = vmatmul.mubr.msk.f32.vlgmr.msra.gmra.mxu0 %vm61_vm1, %v7699_v28  ;;  %621 = vmatprep.subr.mxu1 %v510_v29  ;;  %v742_v31 = vpop.permute.xlu0 %741  ;;  %v744_v32 = vpop.permute.xlu1 %743  ;;  %v7719_v29 = vld [vmem:[%s8980_s1 + $0x38] sm:$0xff] }
  0x8d   :  { %7878 = vmatpush3.msra.mxu0 %v511_v30  ;;  %7875 = vmatmul.mubr.msk.f32.vlgmr.msra.gmra.mxu1 %vm61_vm1, %v29_v22  ;;  %v753_v34 = vsel %vm751_vm4, %v742_v31, %v744_v32 }
  0x8e   :  { %622 = vmatpush1.msra.mxu1 %v509_v33  ;;  %2952 = vrot.lane.b32.xlu0 %v8121_v5, %s8039_s24 }
  0x8f   :  { %2954 = vrot.lane.b32.xlu1 %v8126_v6, %s8039_s24  ;;  %795 = vmatprep.subr.mxu1 %v753_v34 }
  0x90   :  { %v740_v35 = vpop.permute.xlu0 %739  ;;  %v746_v36 = vpop.permute.xlu1 %745  ;;  %655 = vmatprep.mubr.f32.mxu1 %v8026_v2  ;;  %7879 = vmatprep.mubr.msk.f32.mxu0 %vm8038_vm2, %v8026_v2 }
  0x91   :  { %v752_v37 = vsel %vm751_vm4, %v740_v35, %v742_v31  ;;  %7701 = vmatmul.mubr.msk.f32.vlgmr.msra.gmra.mxu1 %vm61_vm1, %v7699_v28  ;;  %7880 = vmatmul.mubr.msk.f32.vlgmr.msra.gmra.mxu0 %vm61_vm1, %v7699_v28  ;;  %v754_v43 = vsel %vm751_vm4, %v744_v32, %v746_v36 }
  0x92   :  { %3191 = vrot.lane.b32.xlu0 %v8091_v0, %s8040_s28  ;;  %796 = vmatpush1.msra.mxu1 %v752_v37 }
  0x93   :  { %3193 = vrot.lane.b32.xlu1 %v8107_v3, %s8040_s28  ;;  %829 = vmatprep.mubr.f32.mxu1 %v8026_v2 }
  0x94   :  { %v748_v39 = vpop.permute.xlu0 %747  ;;  %v750_v40 = vpop.permute.xlu1 %749  ;;  %7882 = vmatprep.subr.mxu1 %v8026_v2  ;;  %900 = vmatprep.mubr.f32.mxu0 %v8026_v2 }
  0x95   :  { %v756_v41 = vsel %vm751_vm4, %v748_v39, %v750_v40  ;;  %7704 = vmatmul.mubr.msk.f32.vlgmr.msra.gmra.mxu1 %vm61_vm1, %v7703_v38  ;;  %v755_v42 = vsel %vm751_vm4, %v746_v36, %v748_v39  ;;  %vm3691_vm4 = vcmask 482304  }
  0x96   :  { %3189 = vrot.lane.b32.xlu0 %v8096_v1, %s8040_s28  ;;  %866 = vmatprep.subr.mxu0 %v755_v42 }
  0x97   :  { %3195 = vrot.lane.b32.xlu1 %v8112_v4, %s8040_s28  ;;  %7883 = vmatpush3.msra.mxu1 %v756_v41  ;;  %v7723_v41 = vld [vmem:[%s8980_s1 + $0x40] sm:$0xff] }
  0x98   :  { %867 = vmatpush1.msra.mxu0 %v754_v43  ;;  %v987_v44 = vpop.permute.xlu0 %986  ;;  %v989_v45 = vpop.permute.xlu1 %988  ;;  %7884 = vmatprep.mubr.msk.f32.mxu1 %vm8038_vm2, %v8026_v2 }
  0x99   :  { %v998_v46 = vsel %vm996_vm5, %v987_v44, %v989_v45  ;;  %7705 = vmatmul.mubr.msk.f32.vlgmr.msra.gmra.mxu0 %vm61_vm1, %v7703_v38  ;;  %7885 = vmatmul.mubr.msk.f32.vlgmr.msra.gmra.mxu1 %vm61_vm1, %v7703_v38 }
  0x9a   :  { %3197 = vrot.lane.b32.xlu0 %v8121_v5, %s8040_s28  ;;  %1040 = vmatprep.subr.mxu0 %v998_v46 }
  0x9b   :  { %3199 = vrot.lane.b32.xlu1 %v8126_v6, %s8040_s28  ;;  %1074 = vmatprep.mubr.f32.mxu0 %v8026_v2  ;;  %s8050_s28 = smov 33  }
  0x9c   :  { %v985_v47 = vpop.permute.xlu0 %984  ;;  %v991_v48 = vpop.permute.xlu1 %990  ;;  %1145 = vmatprep.mubr.f32.mxu1 %v8026_v2 }
  0x9d   :  { %v997_v49 = vsel %vm996_vm5, %v985_v47, %v987_v44  ;;  %v999_v55 = vsel %vm996_vm5, %v989_v45, %v991_v48 }
  0x9e   :  { %3436 = vrot.lane.b32.xlu0 %v8091_v0, %s8041_s9  ;;  %1041 = vmatpush1.msra.mxu0 %v997_v49 }
  0x9f   :  { %3438 = vrot.lane.b32.xlu1 %v8107_v3, %s8041_s9  ;;  %7887 = vmatprep.subr.mxu0 %v8026_v2 }
  0xa0   :  { %v993_v51 = vpop.permute.xlu0 %992  ;;  %v995_v52 = vpop.permute.xlu1 %994  ;;  %7708 = vmatmul.mubr.msk.f32.vlgmr.msra.gmra.mxu0 %vm61_vm1, %v7707_v50 }
  0xa1   :  { %v1001_v53 = vsel %vm996_vm5, %v993_v51, %v995_v52  ;;  %v1000_v54 = vsel %vm996_vm5, %v991_v48, %v993_v51  ;;  %7889 = vmatprep.mubr.msk.f32.mxu0 %vm8038_vm2, %v8026_v2  ;;  %vm3936_vm5 = vcmask 474112  }
  0xa2   :  { %3434 = vrot.lane.b32.xlu0 %v8096_v1, %s8041_s9  ;;  %1111 = vmatprep.subr.mxu1 %v1000_v54 }
  0xa3   :  { %3440 = vrot.lane.b32.xlu1 %v8112_v4, %s8041_s9  ;;  %7888 = vmatpush3.msra.mxu0 %v1001_v53  ;;  %v7727_v53 = vld [vmem:[%s8980_s1 + $0x48] sm:$0xff] }
  0xa4   :  { %1112 = vmatpush1.msra.mxu1 %v999_v55  ;;  %v1232_v56 = vpop.permute.xlu0 %1231  ;;  %v1234_v57 = vpop.permute.xlu1 %1233  ;;  %7890 = vmatmul.mubr.msk.f32.vlgmr.msra.gmra.mxu0 %vm61_vm1, %v7707_v50 }
  0xa5   :  { %v1243_v58 = vsel %vm1241_vm6, %v1232_v56, %v1234_v57  ;;  %7709 = vmatmul.mubr.msk.f32.vlgmr.msra.gmra.mxu1 %vm61_vm1, %v7707_v50  ;;  %1390 = vmatprep.mubr.f32.mxu0 %v8026_v2 }
  0xa6   :  { %3442 = vrot.lane.b32.xlu0 %v8121_v5, %s8041_s9  ;;  %1285 = vmatprep.subr.mxu1 %v1243_v58 }
  0xa7   :  { %3444 = vrot.lane.b32.xlu1 %v8126_v6, %s8041_s9  ;;  %1319 = vmatprep.mubr.f32.mxu1 %v8026_v2  ;;  %s8051_s9 = smov 32  }
  0xa8   :  { %v1230_v59 = vpop.permute.xlu0 %1229  ;;  %v1236_v60 = vpop.permute.xlu1 %1235 }
  0xa9   :  { %v1242_v61 = vsel %vm1241_vm6, %v1230_v59, %v1232_v56  ;;  %v1244_v10 = vsel %vm1241_vm6, %v1234_v57, %v1236_v60 }
  0xaa   :  { %3681 = vrot.lane.b32.xlu0 %v8091_v0, %s8042_s16  ;;  %1286 = vmatpush1.msra.mxu1 %v1242_v61 }
  0xab   :  { %3683 = vrot.lane.b32.xlu1 %v8107_v3, %s8042_s16  ;;  %7892 = vmatprep.subr.mxu1 %v8026_v2 }
  0xac   :  { %v1238_v63 = vpop.permute.xlu0 %1237  ;;  %v1240_v7 = vpop.permute.xlu1 %1239  ;;  %7712 = vmatmul.mubr.msk.f32.vlgmr.msra.gmra.mxu1 %vm61_vm1, %v7711_v62 }
  0xad   :  { %v1246_v8 = vsel %vm1241_vm6, %v1238_v63, %v1240_v7  ;;  %v1245_v9 = vsel %vm1241_vm6, %v1236_v60, %v1238_v63  ;;  %7894 = vmatprep.mubr.msk.f32.mxu1 %vm8038_vm2, %v8026_v2 }
  0xae   :  { %3679 = vrot.lane.b32.xlu0 %v8096_v1, %s8042_s16  ;;  %1356 = vmatprep.subr.mxu0 %v1245_v9 }
  0xaf   :  { %3685 = vrot.lane.b32.xlu1 %v8112_v4, %s8042_s16  ;;  %7893 = vmatpush3.msra.mxu1 %v1246_v8  ;;  %v7731_v8 = vld [vmem:[%s8980_s1 + $0x50] sm:$0xff] }
  0xb0   :  { %1357 = vmatpush1.msra.mxu0 %v1244_v10  ;;  %v1477_v11 = vpop.permute.xlu0 %1476  ;;  %v1479_v12 = vpop.permute.xlu1 %1478  ;;  %7895 = vmatmul.mubr.msk.f32.vlgmr.msra.gmra.mxu1 %vm61_vm1, %v7711_v62 }
  0xb1   :  { %v1488_v13 = vsel %vm1486_vm7, %v1477_v11, %v1479_v12  ;;  %7713 = vmatmul.mubr.msk.f32.vlgmr.msra.gmra.mxu0 %vm61_vm1, %v7711_v62  ;;  %1635 = vmatprep.mubr.f32.mxu1 %v8026_v2 }
  0xb2   :  { %3687 = vrot.lane.b32.xlu0 %v8121_v5, %s8042_s16  ;;  %1530 = vmatprep.subr.mxu0 %v1488_v13 }
  0xb3   :  { %3689 = vrot.lane.b32.xlu1 %v8126_v6, %s8042_s16  ;;  %1564 = vmatprep.mubr.f32.mxu0 %v8026_v2 }
  0xb4   :  { %v1475_v14 = vpop.permute.xlu0 %1474  ;;  %v1481_v15 = vpop.permute.xlu1 %1480 }
  0xb5   :  { %v1487_v16 = vsel %vm1486_vm7, %v1475_v14, %v1477_v11  ;;  %v1489_v22 = vsel %vm1486_vm7, %v1479_v12, %v1481_v15 }
  0xb6   :  { %3926 = vrot.lane.b32.xlu0 %v8091_v0, %s8043_s20  ;;  %1531 = vmatpush1.msra.mxu0 %v1487_v16 }
  0xb7   :  { %3928 = vrot.lane.b32.xlu1 %v8107_v3, %s8043_s20  ;;  %7897 = vmatprep.subr.mxu0 %v8026_v2 }
  0xb8   :  { %v1483_v18 = vpop.permute.xlu0 %1482  ;;  %v1485_v19 = vpop.permute.xlu1 %1484  ;;  %7716 = vmatmul.mubr.msk.f32.vlgmr.msra.gmra.mxu0 %vm61_vm1, %v7715_v17 }
  0xb9   :  { %v1491_v20 = vsel %vm1486_vm7, %v1483_v18, %v1485_v19  ;;  %v1490_v21 = vsel %vm1486_vm7, %v1481_v15, %v1483_v18  ;;  %7899 = vmatprep.mubr.msk.f32.mxu0 %vm8038_vm2, %v8026_v2 }
  0xba   :  { %3924 = vrot.lane.b32.xlu0 %v8096_v1, %s8043_s20  ;;  %1601 = vmatprep.subr.mxu1 %v1490_v21 }
  0xbb   :  { %3930 = vrot.lane.b32.xlu1 %v8112_v4, %s8043_s20  ;;  %7898 = vmatpush3.msra.mxu0 %v1491_v20  ;;  %v7735_v20 = vld [vmem:[%s8980_s1 + $0x58] sm:$0xff] }
  0xbc   :  { %1602 = vmatpush1.msra.mxu1 %v1489_v22  ;;  %v1722_v23 = vpop.permute.xlu0 %1721  ;;  %v1724_v24 = vpop.permute.xlu1 %1723  ;;  %7900 = vmatmul.mubr.msk.f32.vlgmr.msra.gmra.mxu0 %vm61_vm1, %v7715_v17 }
  0xbd   :  { %v1733_v25 = vsel %vm1731_vm8, %v1722_v23, %v1724_v24  ;;  %7717 = vmatmul.mubr.msk.f32.vlgmr.msra.gmra.mxu1 %vm61_vm1, %v7715_v17  ;;  %1880 = vmatprep.mubr.f32.mxu0 %v8026_v2 }
  0xbe   :  { %3932 = vrot.lane.b32.xlu0 %v8121_v5, %s8043_s20  ;;  %1775 = vmatprep.subr.mxu1 %v1733_v25 }
  0xbf   :  { %3934 = vrot.lane.b32.xlu1 %v8126_v6, %s8043_s20  ;;  %1809 = vmatprep.mubr.f32.mxu1 %v8026_v2 }
  0xc0   :  { %v1720_v26 = vpop.permute.xlu0 %1719  ;;  %v1726_v27 = vpop.permute.xlu1 %1725 }
  0xc1   :  { %v1732_v28 = vsel %vm1731_vm8, %v1720_v26, %v1722_v23  ;;  %v1734_v34 = vsel %vm1731_vm8, %v1724_v24, %v1726_v27 }
  0xc2   :  { %4171 = vrot.lane.b32.xlu0 %v8091_v0, %s8044_s26  ;;  %1776 = vmatpush1.msra.mxu1 %v1732_v28 }
  0xc3   :  { %4173 = vrot.lane.b32.xlu1 %v8107_v3, %s8044_s26  ;;  %7902 = vmatprep.subr.mxu1 %v8026_v2 }
  0xc4   :  { %v1728_v30 = vpop.permute.xlu0 %1727  ;;  %v1730_v31 = vpop.permute.xlu1 %1729  ;;  %7720 = vmatmul.mubr.msk.f32.vlgmr.msra.gmra.mxu1 %vm61_vm1, %v7719_v29 }
  0xc5   :  { %v1736_v32 = vsel %vm1731_vm8, %v1728_v30, %v1730_v31  ;;  %v1735_v33 = vsel %vm1731_vm8, %v1726_v27, %v1728_v30  ;;  %7904 = vmatprep.mubr.msk.f32.mxu1 %vm8038_vm2, %v8026_v2 }
  0xc6   :  { %4169 = vrot.lane.b32.xlu0 %v8096_v1, %s8044_s26  ;;  %1846 = vmatprep.subr.mxu0 %v1735_v33 }
  0xc7   :  { %4175 = vrot.lane.b32.xlu1 %v8112_v4, %s8044_s26  ;;  %7903 = vmatpush3.msra.mxu1 %v1736_v32  ;;  %v7739_v32 = vld [vmem:[%s8980_s1 + $0x60] sm:$0xff] }
  0xc8   :  { %1847 = vmatpush1.msra.mxu0 %v1734_v34  ;;  %v1967_v35 = vpop.permute.xlu0 %1966  ;;  %v1969_v36 = vpop.permute.xlu1 %1968  ;;  %7905 = vmatmul.mubr.msk.f32.vlgmr.msra.gmra.mxu1 %vm61_vm1, %v7719_v29 }
  0xc9   :  { %v1978_v37 = vsel %vm1976_vm9, %v1967_v35, %v1969_v36  ;;  %7721 = vmatmul.mubr.msk.f32.vlgmr.msra.gmra.mxu0 %vm61_vm1, %v7719_v29  ;;  %2125 = vmatprep.mubr.f32.mxu1 %v8026_v2 }
  0xca   :  { %4177 = vrot.lane.b32.xlu0 %v8121_v5, %s8044_s26  ;;  %2020 = vmatprep.subr.mxu0 %v1978_v37 }
  0xcb   :  { %4179 = vrot.lane.b32.xlu1 %v8126_v6, %s8044_s26  ;;  %2054 = vmatprep.mubr.f32.mxu0 %v8026_v2 }
  0xcc   :  { %v1965_v38 = vpop.permute.xlu0 %1964  ;;  %v1971_v39 = vpop.permute.xlu1 %1970 }
  0xcd   :  { %v1977_v40 = vsel %vm1976_vm9, %v1965_v38, %v1967_v35  ;;  %v1979_v46 = vsel %vm1976_vm9, %v1969_v36, %v1971_v39 }
  0xce   :  { %4416 = vrot.lane.b32.xlu0 %v8091_v0, %s8045_s29  ;;  %2021 = vmatpush1.msra.mxu0 %v1977_v40 }
  0xcf   :  { %4418 = vrot.lane.b32.xlu1 %v8107_v3, %s8045_s29  ;;  %7907 = vmatprep.subr.mxu0 %v8026_v2 }
  0xd0   :  { %v1973_v42 = vpop.permute.xlu0 %1972  ;;  %v1975_v43 = vpop.permute.xlu1 %1974  ;;  %7724 = vmatmul.mubr.msk.f32.vlgmr.msra.gmra.mxu0 %vm61_vm1, %v7723_v41 }
  0xd1   :  { %v1981_v44 = vsel %vm1976_vm9, %v1973_v42, %v1975_v43  ;;  %v1980_v45 = vsel %vm1976_vm9, %v1971_v39, %v1973_v42  ;;  %7909 = vmatprep.mubr.msk.f32.mxu0 %vm8038_vm2, %v8026_v2  ;;  %vm4181_vm9 = vcmask 465920  }
  0xd2   :  { %4414 = vrot.lane.b32.xlu0 %v8096_v1, %s8045_s29  ;;  %2091 = vmatprep.subr.mxu1 %v1980_v45 }
  0xd3   :  { %4420 = vrot.lane.b32.xlu1 %v8112_v4, %s8045_s29  ;;  %7908 = vmatpush3.msra.mxu0 %v1981_v44  ;;  %v7743_v44 = vld [vmem:[%s8980_s1 + $0x68] sm:$0xff] }
  0xd4   :  { %2092 = vmatpush1.msra.mxu1 %v1979_v46  ;;  %v2212_v47 = vpop.permute.xlu0 %2211  ;;  %v2214_v48 = vpop.permute.xlu1 %2213  ;;  %7910 = vmatmul.mubr.msk.f32.vlgmr.msra.gmra.mxu0 %vm61_vm1, %v7723_v41 }
  0xd5   :  { %v2223_v49 = vsel %vm2221_vm10, %v2212_v47, %v2214_v48  ;;  %7725 = vmatmul.mubr.msk.f32.vlgmr.msra.gmra.mxu1 %vm61_vm1, %v7723_v41  ;;  %2370 = vmatprep.mubr.f32.mxu0 %v8026_v2 }
  0xd6   :  { %4422 = vrot.lane.b32.xlu0 %v8121_v5, %s8045_s29  ;;  %2265 = vmatprep.subr.mxu1 %v2223_v49 }
  0xd7   :  { %4424 = vrot.lane.b32.xlu1 %v8126_v6, %s8045_s29  ;;  %2299 = vmatprep.mubr.f32.mxu1 %v8026_v2 }
  0xd8   :  { %v2210_v50 = vpop.permute.xlu0 %2209  ;;  %v2216_v51 = vpop.permute.xlu1 %2215 }
  0xd9   :  { %v2222_v52 = vsel %vm2221_vm10, %v2210_v50, %v2212_v47  ;;  %v2224_v58 = vsel %vm2221_vm10, %v2214_v48, %v2216_v51 }
  0xda   :  { %4661 = vrot.lane.b32.xlu0 %v8091_v0, %s8046_s8  ;;  %2266 = vmatpush1.msra.mxu1 %v2222_v52  ;;  %v7747_v52 = vld [vmem:[%s8980_s1 + $0x70] sm:$0xff] }
  0xdb   :  { %4663 = vrot.lane.b32.xlu1 %v8107_v3, %s8046_s8  ;;  %7912 = vmatprep.subr.mxu1 %v8026_v2 }
  0xdc   :  { %v2218_v54 = vpop.permute.xlu0 %2217  ;;  %v2220_v55 = vpop.permute.xlu1 %2219  ;;  %7728 = vmatmul.mubr.msk.f32.vlgmr.msra.gmra.mxu1 %vm61_vm1, %v7727_v53 }
  0xdd   :  { %v2226_v56 = vsel %vm2221_vm10, %v2218_v54, %v2220_v55  ;;  %v2225_v57 = vsel %vm2221_vm10, %v2216_v51, %v2218_v54  ;;  %7914 = vmatprep.mubr.msk.f32.mxu1 %vm8038_vm2, %v8026_v2  ;;  %vm4426_vm10 = vcmask 457728  }
  0xde   :  { %4659 = vrot.lane.b32.xlu0 %v8096_v1, %s8046_s8  ;;  %2336 = vmatprep.subr.mxu0 %v2225_v57  ;;  %v8022_v57 = vld [vmem:[%s8979_s0] sm:$0xff] }
  0xdf   :  { %4665 = vrot.lane.b32.xlu1 %v8112_v4, %s8046_s8  ;;  %7913 = vmatpush3.msra.mxu1 %v2226_v56 }
  0xe0   :  { %2337 = vmatpush1.msra.mxu0 %v2224_v58  ;;  %v2457_v59 = vpop.permute.xlu0 %2456  ;;  %v2459_v60 = vpop.permute.xlu1 %2458  ;;  %7915 = vmatmul.mubr.msk.f32.vlgmr.msra.gmra.mxu1 %vm61_vm1, %v7727_v53  ;;  %v8023_v58 = vld [vmem:[%s8979_s0 + $0x18] sm:$0xff] }
  0xe1   :  { %v2468_v61 = vsel %vm2466_vm11, %v2457_v59, %v2459_v60  ;;  %7729 = vmatmul.mubr.msk.f32.vlgmr.msra.gmra.mxu0 %vm61_vm1, %v7727_v53  ;;  %2615 = vmatprep.mubr.f32.mxu1 %v8026_v2  ;;  %v8020_v53 = vld [vmem:[%s8979_s0 + $0x8] sm:$0xff] }
  0xe2   :  { %4667 = vrot.lane.b32.xlu0 %v8121_v5, %s8046_s8  ;;  %2510 = vmatprep.subr.mxu0 %v2468_v61 }
  0xe3   :  { %4669 = vrot.lane.b32.xlu1 %v8126_v6, %s8046_s8  ;;  %2544 = vmatprep.mubr.f32.mxu0 %v8026_v2 }
  0xe4   :  { %v2455_v62 = vpop.permute.xlu0 %2454  ;;  %v2461_v63 = vpop.permute.xlu1 %2460 }
  0xe5   :  { %v2467_v7 = vsel %vm2466_vm11, %v2455_v62, %v2457_v59  ;;  %v2469_v13 = vsel %vm2466_vm11, %v2459_v60, %v2461_v63  ;;  %v8024_v62 = vld [vmem:[%s8979_s0 + $0x20] sm:$0xff] }
  0xe6   :  { %4906 = vrot.lane.b32.xlu0 %v8091_v0, %s8047_s12  ;;  %2511 = vmatpush1.msra.mxu0 %v2467_v7  ;;  %v8025_v7 = vld [vmem:[%s8979_s0 + $0x28] sm:$0xff] }
  0xe7   :  { %4908 = vrot.lane.b32.xlu1 %v8107_v3, %s8047_s12  ;;  %7917 = vmatprep.subr.mxu0 %v8026_v2 }
  0xe8   :  { %v2463_v9 = vpop.permute.xlu0 %2462  ;;  %v2465_v10 = vpop.permute.xlu1 %2464  ;;  %7732 = vmatmul.mubr.msk.f32.vlgmr.msra.gmra.mxu0 %vm61_vm1, %v7731_v8 }
  0xe9   :  { %v2471_v11 = vsel %vm2466_vm11, %v2463_v9, %v2465_v10  ;;  %v2470_v12 = vsel %vm2466_vm11, %v2461_v63, %v2463_v9  ;;  %7919 = vmatprep.mubr.msk.f32.mxu0 %vm8038_vm2, %v8026_v2  ;;  %v7751_v9 = vld [vmem:[%s8980_s1 + $0x78] sm:$0xff] }
  0xea   :  { %4904 = vrot.lane.b32.xlu0 %v8096_v1, %s8047_s12  ;;  %2581 = vmatprep.subr.mxu1 %v2470_v12 }
  0xeb   :  { %4910 = vrot.lane.b32.xlu1 %v8112_v4, %s8047_s12  ;;  %7918 = vmatpush3.msra.mxu0 %v2471_v11 }
  0xec   :  { %2582 = vmatpush1.msra.mxu1 %v2469_v13  ;;  %v2702_v14 = vpop.permute.xlu0 %2701  ;;  %7920 = vmatmul.mubr.msk.f32.vlgmr.msra.gmra.mxu0 %vm61_vm1, %v7731_v8 }
  0xed   :  { %v2704_v15 = vpop.permute.xlu1 %2703  ;;  %7733 = vmatmul.mubr.msk.f32.vlgmr.msra.gmra.mxu1 %vm61_vm1, %v7731_v8  ;;  %2860 = vmatprep.mubr.f32.mxu0 %v8026_v2 }
  0xee   :  { %4912 = vrot.lane.b32.xlu0 %v8121_v5, %s8047_s12  ;;  %v2713_v16 = vsel %vm2711_vm12, %v2702_v14, %v2704_v15  ;;  %2789 = vmatprep.mubr.f32.mxu1 %v8026_v2 }
  0xef   :  { %4914 = vrot.lane.b32.xlu1 %v8126_v6, %s8047_s12  ;;  %2755 = vmatprep.subr.mxu1 %v2713_v16 }
  0xf0   :  { %v2700_v17 = vpop.permute.xlu0 %2699 }
  0xf1   :  { %v2712_v18 = vsel %vm2711_vm12, %v2700_v17, %v2702_v14  ;;  %v2706_v19 = vpop.permute.xlu1 %2705 }
  0xf2   :  { %5151 = vrot.lane.b32.xlu0 %v8091_v0, %s8048_s19  ;;  %2756 = vmatpush1.msra.mxu1 %v2712_v18  ;;  %v2714_v25 = vsel %vm2711_vm12, %v2704_v15, %v2706_v19 }
  0xf3   :  { %5153 = vrot.lane.b32.xlu1 %v8107_v3, %s8048_s19  ;;  %7922 = vmatprep.subr.mxu1 %v8026_v2 }
  0xf4   :  { %v2708_v21 = vpop.permute.xlu0 %2707  ;;  %7736 = vmatmul.mubr.msk.f32.vlgmr.msra.gmra.mxu1 %vm61_vm1, %v7735_v20 }
  0xf5   :  { %v2710_v22 = vpop.permute.xlu1 %2709  ;;  %v2715_v23 = vsel %vm2711_vm12, %v2706_v19, %v2708_v21  ;;  %7924 = vmatprep.mubr.msk.f32.mxu1 %vm8038_vm2, %v8026_v2 }
  0xf6   :  { %v2716_v24 = vsel %vm2711_vm12, %v2708_v21, %v2710_v22  ;;  %5149 = vrot.lane.b32.xlu0 %v8096_v1, %s8048_s19  ;;  %2826 = vmatprep.subr.mxu0 %v2715_v23  ;;  %v7755_v21 = vld [vmem:[%s8980_s1 + $0x80] sm:$0xff] }
  0xf7   :  { %5155 = vrot.lane.b32.xlu1 %v8112_v4, %s8048_s19  ;;  %7923 = vmatpush3.msra.mxu1 %v2716_v24 }
  0xf8   :  { %2827 = vmatpush1.msra.mxu0 %v2714_v25  ;;  %v2947_v26 = vpop.permute.xlu0 %2946  ;;  %7925 = vmatmul.mubr.msk.f32.vlgmr.msra.gmra.mxu1 %vm61_vm1, %v7735_v20 }
  0xf9   :  { %v2949_v27 = vpop.permute.xlu1 %2948  ;;  %7737 = vmatmul.mubr.msk.f32.vlgmr.msra.gmra.mxu0 %vm61_vm1, %v7735_v20  ;;  %3105 = vmatprep.mubr.f32.mxu1 %v8026_v2 }
  0xfa   :  { %5157 = vrot.lane.b32.xlu0 %v8121_v5, %s8048_s19  ;;  %v2958_v28 = vsel %vm2956_vm13, %v2947_v26, %v2949_v27  ;;  %3034 = vmatprep.mubr.f32.mxu0 %v8026_v2 }
  0xfb   :  { %5159 = vrot.lane.b32.xlu1 %v8126_v6, %s8048_s19  ;;  %3000 = vmatprep.subr.mxu0 %v2958_v28 }
  0xfc   :  { %v2945_v29 = vpop.permute.xlu0 %2944 }
  0xfd   :  { %v2957_v30 = vsel %vm2956_vm13, %v2945_v29, %v2947_v26  ;;  %v2951_v31 = vpop.permute.xlu1 %2950 }
  0xfe   :  { %5396 = vrot.lane.b32.xlu0 %v8091_v0, %s8049_s23  ;;  %3001 = vmatpush1.msra.mxu0 %v2957_v30  ;;  %v2959_v37 = vsel %vm2956_vm13, %v2949_v27, %v2951_v31 }
  0xff   :  { %5398 = vrot.lane.b32.xlu1 %v8107_v3, %s8049_s23  ;;  %7927 = vmatprep.subr.mxu0 %v8026_v2 }
 0x100   :  { %v2953_v33 = vpop.permute.xlu0 %2952  ;;  %7740 = vmatmul.mubr.msk.f32.vlgmr.msra.gmra.mxu0 %vm61_vm1, %v7739_v32 }
 0x101   :  { %v2955_v34 = vpop.permute.xlu1 %2954  ;;  %v2960_v35 = vsel %vm2956_vm13, %v2951_v31, %v2953_v33  ;;  %7929 = vmatprep.mubr.msk.f32.mxu0 %vm8038_vm2, %v8026_v2 }
 0x102   :  { %v2961_v36 = vsel %vm2956_vm13, %v2953_v33, %v2955_v34  ;;  %5394 = vrot.lane.b32.xlu0 %v8096_v1, %s8049_s23  ;;  %3071 = vmatprep.subr.mxu1 %v2960_v35  ;;  %v7759_v33 = vld [vmem:[%s8980_s1 + $0x88] sm:$0xff] }
 0x103   :  { %5400 = vrot.lane.b32.xlu1 %v8112_v4, %s8049_s23  ;;  %7928 = vmatpush3.msra.mxu0 %v2961_v36 }
 0x104   :  { %3072 = vmatpush1.msra.mxu1 %v2959_v37  ;;  %v3192_v38 = vpop.permute.xlu0 %3191  ;;  %7930 = vmatmul.mubr.msk.f32.vlgmr.msra.gmra.mxu0 %vm61_vm1, %v7739_v32 }
 0x105   :  { %v3194_v39 = vpop.permute.xlu1 %3193  ;;  %7741 = vmatmul.mubr.msk.f32.vlgmr.msra.gmra.mxu1 %vm61_vm1, %v7739_v32  ;;  %3350 = vmatprep.mubr.f32.mxu0 %v8026_v2 }
 0x106   :  { %5402 = vrot.lane.b32.xlu0 %v8121_v5, %s8049_s23  ;;  %v3203_v40 = vsel %vm3201_vm14, %v3192_v38, %v3194_v39  ;;  %3279 = vmatprep.mubr.f32.mxu1 %v8026_v2 }
 0x107   :  { %5404 = vrot.lane.b32.xlu1 %v8126_v6, %s8049_s23  ;;  %3245 = vmatprep.subr.mxu1 %v3203_v40 }
 0x108   :  { %v3190_v41 = vpop.permute.xlu0 %3189 }
 0x109   :  { %v3202_v42 = vsel %vm3201_vm14, %v3190_v41, %v3192_v38  ;;  %v3196_v43 = vpop.permute.xlu1 %3195 }
 0x10a   :  { %5641 = vrot.lane.b32.xlu0 %v8091_v0, %s8050_s28  ;;  %3246 = vmatpush1.msra.mxu1 %v3202_v42  ;;  %v3204_v0 = vsel %vm3201_vm14, %v3194_v39, %v3196_v43 }
 0x10b   :  { %5643 = vrot.lane.b32.xlu1 %v8107_v3, %s8050_s28  ;;  %7932 = vmatprep.subr.mxu1 %v8026_v2 }
 0x10c   :  { %v3198_v45 = vpop.permute.xlu0 %3197  ;;  %7744 = vmatmul.mubr.msk.f32.vlgmr.msra.gmra.mxu1 %vm61_vm1, %v7743_v44 }
 0x10d   :  { %v3200_v46 = vpop.permute.xlu1 %3199  ;;  %v3205_v47 = vsel %vm3201_vm14, %v3196_v43, %v3198_v45  ;;  %7934 = vmatprep.mubr.msk.f32.mxu1 %vm8038_vm2, %v8026_v2 }
 0x10e   :  { %v3206_v48 = vsel %vm3201_vm14, %v3198_v45, %v3200_v46  ;;  %5639 = vrot.lane.b32.xlu0 %v8096_v1, %s8050_s28  ;;  %3316 = vmatprep.subr.mxu0 %v3205_v47  ;;  %vm4671_vm14 = vcmask 449536  }
 0x10f   :  { %5645 = vrot.lane.b32.xlu1 %v8112_v4, %s8050_s28  ;;  %7933 = vmatpush3.msra.mxu1 %v3206_v48 }
 0x110   :  { %3317 = vmatpush1.msra.mxu0 %v3204_v0  ;;  %v3437_v3 = vpop.permute.xlu0 %3436  ;;  %7935 = vmatmul.mubr.msk.f32.vlgmr.msra.gmra.mxu1 %vm61_vm1, %v7743_v44 }
 0x111   :  { %v3439_v49 = vpop.permute.xlu1 %3438  ;;  %7745 = vmatmul.mubr.msk.f32.vlgmr.msra.gmra.mxu0 %vm61_vm1, %v7743_v44  ;;  %3595 = vmatprep.mubr.f32.mxu1 %v8026_v2 }
 0x112   :  { %5647 = vrot.lane.b32.xlu0 %v8121_v5, %s8050_s28  ;;  %v3448_v1 = vsel %vm3446_vm15, %v3437_v3, %v3439_v49  ;;  %3524 = vmatprep.mubr.f32.mxu0 %v8026_v2  ;;  %v8021_v5 = vld [vmem:[%s8979_s0 + $0x10] sm:$0xff] }
 0x113   :  { %5649 = vrot.lane.b32.xlu1 %v8126_v6, %s8050_s28  ;;  %3490 = vmatprep.subr.mxu0 %v3448_v1 }
 0x114   :  { %v3435_v4 = vpop.permute.xlu0 %3434 }
 0x115   :  { %v3447_v50 = vsel %vm3446_vm15, %v3435_v4, %v3437_v3  ;;  %v3441_v51 = vpop.permute.xlu1 %3440  ;;  %v7763_v3 = vld [vmem:[%s8980_s1 + $0x90] sm:$0xff] }
 0x116   :  { %5886 = vrot.lane.b32.xlu0 %v8020_v53, %s8051_s9  ;;  %3491 = vmatpush1.msra.mxu0 %v3447_v50  ;;  %v3449_v59 = vsel %vm3446_vm15, %v3439_v49, %v3441_v51 }
 0x117   :  { %5888 = vrot.lane.b32.xlu1 %v8021_v5, %s8051_s9  ;;  %7937 = vmatprep.subr.mxu0 %v8026_v2 }
 0x118   :  { %v3443_v6 = vpop.permute.xlu0 %3442  ;;  %7748 = vmatmul.mubr.msk.f32.vlgmr.msra.gmra.mxu0 %vm61_vm1, %v7747_v52 }
 0x119   :  { %v3445_v54 = vpop.permute.xlu1 %3444  ;;  %v3450_v55 = vsel %vm3446_vm15, %v3441_v51, %v3443_v6  ;;  %7939 = vmatprep.mubr.msk.f32.mxu0 %vm8038_vm2, %v8026_v2 }
 0x11a   :  { %v3451_v56 = vsel %vm3446_vm15, %v3443_v6, %v3445_v54  ;;  %5884 = vrot.lane.b32.xlu0 %v8022_v57, %s8051_s9  ;;  %3561 = vmatprep.subr.mxu1 %v3450_v55  ;;  %vm4916_vm15 = vcmask 293888  }
 0x11b   :  { %5890 = vrot.lane.b32.xlu1 %v8023_v58, %s8051_s9  ;;  %7938 = vmatpush3.msra.mxu0 %v3451_v56 }
 0x11c   :  { %3562 = vmatpush1.msra.mxu1 %v3449_v59  ;;  %v3682_v60 = vpop.permute.xlu0 %3681  ;;  %7940 = vmatmul.mubr.msk.f32.vlgmr.msra.gmra.mxu0 %vm61_vm1, %v7747_v52 }
 0x11d   :  { %7749 = vmatmul.mubr.msk.f32.vlgmr.msra.gmra.mxu1 %vm61_vm1, %v7747_v52  ;;  %v3684_v61 = vpop.permute.xlu1 %3683  ;;  %3840 = vmatprep.mubr.f32.mxu0 %v8026_v2 }
 0x11e   :  { %5892 = vrot.lane.b32.xlu0 %v8024_v62, %s8051_s9  ;;  %v3693_v63 = vsel %vm3691_vm4, %v3682_v60, %v3684_v61  ;;  %3769 = vmatprep.mubr.f32.mxu1 %v8026_v2 }
 0x11f   :  { %5894 = vrot.lane.b32.xlu1 %v8025_v7, %s8051_s9  ;;  %3735 = vmatprep.subr.mxu1 %v3693_v63 }
 0x120   :  { %v3680_v8 = vpop.permute.xlu0 %3679 }
 0x121   :  { %v3692_v10 = vsel %vm3691_vm4, %v3680_v8, %v3682_v60  ;;  %v3686_v11 = vpop.permute.xlu1 %3685 }
 0x122   :  { %3736 = vmatpush1.msra.mxu1 %v3692_v10  ;;  %v3694_v16 = vsel %vm3691_vm4, %v3684_v61, %v3686_v11 }
 0x123   :  { %7752 = vmatmul.mubr.msk.f32.vlgmr.msra.gmra.mxu1 %vm61_vm1, %v7751_v9  ;;  %7942 = vmatprep.subr.mxu1 %v8026_v2 }
 0x124   :  { %v3688_v12 = vpop.permute.xlu0 %3687  ;;  %7944 = vmatprep.mubr.msk.f32.mxu1 %vm8038_vm2, %v8026_v2 }
 0x125   :  { %v3690_v13 = vpop.permute.xlu1 %3689  ;;  %v3695_v14 = vsel %vm3691_vm4, %v3686_v11, %v3688_v12 }
 0x126   :  { %v3696_v15 = vsel %vm3691_vm4, %v3688_v12, %v3690_v13  ;;  %3806 = vmatprep.subr.mxu0 %v3695_v14  ;;  %v8052_v12 = vmov 0   ;;  %v6127_v13 = vld [vmem:[%s8981_s2] sm:$0xff]  ;;  %vm5161_vm4 = vcmask 285696  }
 0x127   :  { %7943 = vmatpush3.msra.mxu1 %v3696_v15  ;;  %3807 = vmatpush1.msra.mxu0 %v3694_v16 }
 0x128   :  { %7945 = vmatmul.mubr.msk.f32.vlgmr.msra.gmra.mxu1 %vm61_vm1, %v7751_v9  ;;  %v3927_v17 = vpop.permute.xlu0 %3926  ;;  %7753 = vmatmul.mubr.msk.f32.vlgmr.msra.gmra.mxu0 %vm61_vm1, %v7751_v9 }
 0x129   :  { %v3929_v18 = vpop.permute.xlu1 %3928  ;;  %4014 = vmatprep.mubr.f32.mxu0 %v8026_v2  ;;  %4085 = vmatprep.mubr.f32.mxu1 %v8026_v2 }
 0x12a   :  { %v3938_v19 = vsel %vm3936_vm5, %v3927_v17, %v3929_v18  ;;  %8019 = vset.pattern.permute.xlu0 %v8052_v12 }
 0x12b   :  { %3980 = vmatprep.subr.mxu0 %v3938_v19  ;;  %6130 = vperm.xlu0 %8019, %v6127_v13  }
 0x12c   :  { %v3925_v20 = vpop.permute.xlu0 %3924 }
 0x12d   :  { %v3937_v22 = vsel %vm3936_vm5, %v3925_v20, %v3927_v17  ;;  %v3931_v23 = vpop.permute.xlu1 %3930  ;;  %v7767_v17 = vld [vmem:[%s8980_s1 + $0x98] sm:$0xff] }
 0x12e   :  { %3981 = vmatpush1.msra.mxu0 %v3937_v22  ;;  %v3939_v27 = vsel %vm3936_vm5, %v3929_v18, %v3931_v23 }
 0x12f   :  { %7756 = vmatmul.mubr.msk.f32.vlgmr.msra.gmra.mxu0 %vm61_vm1, %v7755_v21  ;;  %7947 = vmatprep.subr.mxu0 %v8026_v2 }
 0x130   :  { %v3933_v24 = vpop.permute.xlu0 %3932  ;;  %7949 = vmatprep.mubr.msk.f32.mxu0 %vm8038_vm2, %v8026_v2 }
 0x131   :  { %v3935_v25 = vpop.permute.xlu1 %3934  ;;  %v3940_v26 = vsel %vm3936_vm5, %v3931_v23, %v3933_v24 }
 0x132   :  { %v3941_v28 = vsel %vm3936_vm5, %v3933_v24, %v3935_v25  ;;  %4051 = vmatprep.subr.mxu1 %v3940_v26  ;;  %vm5406_vm5 = vcmask 277504  }
 0x133   :  { %7948 = vmatpush3.msra.mxu0 %v3941_v28  ;;  %4052 = vmatpush1.msra.mxu1 %v3939_v27 }
 0x134   :  { %7950 = vmatmul.mubr.msk.f32.vlgmr.msra.gmra.mxu0 %vm61_vm1, %v7755_v21  ;;  %v4172_v29 = vpop.permute.xlu0 %4171  ;;  %7757 = vmatmul.mubr.msk.f32.vlgmr.msra.gmra.mxu1 %vm61_vm1, %v7755_v21 }
 0x135   :  { %v4174_v30 = vpop.permute.xlu1 %4173  ;;  %4259 = vmatprep.mubr.f32.mxu1 %v8026_v2  ;;  %4330 = vmatprep.mubr.f32.mxu0 %v8026_v2 }
 0x136   :  { %v4183_v31 = vsel %vm4181_vm9, %v4172_v29, %v4174_v30 }
 0x137   :  { %4225 = vmatprep.subr.mxu1 %v4183_v31 }
 0x138   :  { %v4170_v32 = vpop.permute.xlu0 %4169 }
 0x139   :  { %v4182_v34 = vsel %vm4181_vm9, %v4170_v32, %v4172_v29  ;;  %v4176_v35 = vpop.permute.xlu1 %4175 }
 0x13a   :  { %4226 = vmatpush1.msra.mxu1 %v4182_v34  ;;  %v4184_v40 = vsel %vm4181_vm9, %v4174_v30, %v4176_v35 }
 0x13b   :  { %7760 = vmatmul.mubr.msk.f32.vlgmr.msra.gmra.mxu1 %vm61_vm1, %v7759_v33  ;;  %7952 = vmatprep.subr.mxu1 %v8026_v2 }
 0x13c   :  { %v4178_v36 = vpop.permute.xlu0 %4177  ;;  %7954 = vmatprep.mubr.msk.f32.mxu1 %vm8038_vm2, %v8026_v2  ;;  %v131_v37 = vpop.f32.mrf.mxu0 }
 0x13d   :  { %v4180_v38 = vpop.permute.xlu1 %4179  ;;  %v4185_v39 = vsel %vm4181_vm9, %v4176_v35, %v4178_v36 }
 0x13e   :  { %v4186_v41 = vsel %vm4181_vm9, %v4178_v36, %v4180_v38  ;;  %4296 = vmatprep.subr.mxu0 %v4185_v39  ;;  %v133_v42 = vpop.f32.mrf.mxu0  ;;  %vm5651_vm9 = vcmask 269312  }
 0x13f   :  { %7953 = vmatpush3.msra.mxu1 %v4186_v41  ;;  %4297 = vmatpush1.msra.mxu0 %v4184_v40 }
 0x140   :  { %7955 = vmatmul.mubr.msk.f32.vlgmr.msra.gmra.mxu1 %vm61_vm1, %v7759_v33  ;;  %v4417_v43 = vpop.permute.xlu0 %4416  ;;  %7761 = vmatmul.mubr.msk.f32.vlgmr.msra.gmra.mxu0 %vm61_vm1, %v7759_v33 }
 0x141   :  { %v4419_v44 = vpop.permute.xlu1 %4418  ;;  %4504 = vmatprep.mubr.f32.mxu0 %v8026_v2  ;;  %4575 = vmatprep.mubr.f32.mxu1 %v8026_v2  ;;  %v202_v45 = vpop.f32.mrf.mxu1 }
 0x142   :  { %v4428_v46 = vsel %vm4426_vm10, %v4417_v43, %v4419_v44  ;;  %v273_v47 = vpop.f32.mrf.mxu0 }
 0x143   :  { %4470 = vmatprep.subr.mxu0 %v4428_v46  ;;  %v204_v48 = vpop.f32.mrf.mxu1 }
 0x144   :  { %v4415_v0 = vpop.permute.xlu0 %4414  ;;  %v7871_v49 = vpop.f32.mrf.mxu0 }
 0x145   :  { %v4427_v1 = vsel %vm4426_vm10, %v4415_v0, %v4417_v43  ;;  %v4421_v4 = vpop.permute.xlu1 %4420 }
 0x146   :  { %4471 = vmatpush1.msra.mxu0 %v4427_v1  ;;  %v417_v50 = vpop.f32.mrf.mxu0  ;;  %v4429_v56 = vsel %vm4426_vm10, %v4419_v44, %v4421_v4 }
 0x147   :  { %7764 = vmatmul.mubr.msk.f32.vlgmr.msra.gmra.mxu0 %vm61_vm1, %v7763_v3  ;;  %7957 = vmatprep.subr.mxu0 %v8026_v2  ;;  %v418_v51 = vadd.f32 %v417_v50, %v202_v45  ;;  %v7771_v45 = vld [vmem:[%s8980_s1 + $0xa0] sm:$0xff] }
 0x148   :  { %v4423_v52 = vpop.permute.xlu0 %4422  ;;  %7959 = vmatprep.mubr.msk.f32.mxu0 %vm8038_vm2, %v8026_v2  ;;  %v346_v53 = vpop.f32.mrf.mxu1 }
 0x149   :  { %v4425_v5 = vpop.permute.xlu1 %4424  ;;  %v4430_v6 = vsel %vm4426_vm10, %v4421_v4, %v4423_v52  ;;  %v347_v54 = vadd.f32 %v346_v53, %v131_v37  ;;  %v419_v55 = vpop.f32.mrf.mxu0 }
 0x14a   :  { %v4431_v57 = vsel %vm4426_vm10, %v4423_v52, %v4425_v5  ;;  %4541 = vmatprep.subr.mxu1 %v4430_v6  ;;  %v348_v58 = vpop.f32.mrf.mxu1  ;;  %v420_v59 = vadd.f32 %v419_v55, %v204_v48  ;;  %vm5896_vm10 = vcmask 261120  }
 0x14b   :  { %7958 = vmatpush3.msra.mxu0 %v4431_v57  ;;  %4542 = vmatpush1.msra.mxu1 %v4429_v56  ;;  %v349_v60 = vadd.f32 %v348_v58, %v133_v42 }
 0x14c   :  { %7960 = vmatmul.mubr.msk.f32.vlgmr.msra.gmra.mxu0 %vm61_vm1, %v7763_v3  ;;  %v4662_v61 = vpop.permute.xlu0 %4661  ;;  %7765 = vmatmul.mubr.msk.f32.vlgmr.msra.gmra.mxu1 %vm61_vm1, %v7763_v3  ;;  %v586_v62 = vpop.f32.mrf.mxu0 }
 0x14d   :  { %v4664_v63 = vpop.permute.xlu1 %4663  ;;  %4749 = vmatprep.mubr.f32.mxu1 %v8026_v2  ;;  %4820 = vmatprep.mubr.f32.mxu0 %v8026_v2  ;;  %v488_v7 = vpop.f32.mrf.mxu1  ;;  %v732_v8 = vadd.f32 %v586_v62, %v347_v54 }
 0x14e   :  { %v4673_v9 = vsel %vm4671_vm14, %v4662_v61, %v4664_v63  ;;  %v489_v10 = vadd.f32 %v488_v7, %v273_v47  ;;  %v588_v11 = vpop.f32.mrf.mxu0 }
 0x14f   :  { %4715 = vmatprep.subr.mxu1 %v4673_v9  ;;  %v7876_v14 = vpop.f32.mrf.mxu1  ;;  %v733_v15 = vadd.f32 %v588_v11, %v349_v60 }
 0x150   :  { %v4660_v16 = vpop.permute.xlu0 %4659 }
 0x151   :  { %v4672_v18 = vsel %vm4671_vm14, %v4660_v16, %v4662_v61  ;;  %v4666_v19 = vpop.permute.xlu1 %4665  ;;  %v657_v20 = vpop.f32.mrf.mxu1 }
 0x152   :  { %4716 = vmatpush1.msra.mxu1 %v4672_v18  ;;  %v734_v21 = vadd.f32 %v657_v20, %v418_v51  ;;  %v728_v22 = vpop.f32.mrf.mxu0  ;;  %v4674_v31 = vsel %vm4671_vm14, %v4664_v63, %v4666_v19  ;;  %v7775_v63 = vld [vmem:[%s8980_s1 + $0xa8] sm:$0xff] }
 0x153   :  { %7768 = vmatmul.mubr.msk.f32.vlgmr.msra.gmra.mxu1 %vm61_vm1, %v7767_v17  ;;  %7962 = vmatprep.subr.mxu1 %v8026_v2  ;;  %v659_v23 = vpop.f32.mrf.mxu1  ;;  %v736_v24 = vadd.f32 %v728_v22, %v489_v10 }
 0x154   :  { %v4668_v25 = vpop.permute.xlu0 %4667  ;;  %7964 = vmatprep.mubr.msk.f32.mxu1 %vm8038_vm2, %v8026_v2  ;;  %v735_v26 = vadd.f32 %v659_v23, %v420_v59  ;;  %v7881_v27 = vpop.f32.mrf.mxu0 }
 0x155   :  { %v4670_v28 = vpop.permute.xlu1 %4669  ;;  %v4675_v29 = vsel %vm4671_vm14, %v4666_v19, %v4668_v25  ;;  %v831_v30 = vpop.f32.mrf.mxu1 }
 0x156   :  { %v4676_v32 = vsel %vm4671_vm14, %v4668_v25, %v4670_v28  ;;  %4786 = vmatprep.subr.mxu0 %v4675_v29  ;;  %v977_v33 = vadd.f32 %v831_v30, %v732_v8  ;;  %v7779_v29 = vld [vmem:[%s8980_s1 + $0xb0] sm:$0xff] }
 0x157   :  { %7963 = vmatpush3.msra.mxu1 %v4676_v32  ;;  %4787 = vmatpush1.msra.mxu0 %v4674_v31  ;;  %v833_v34 = vpop.f32.mrf.mxu1 }
 0x158   :  { %7965 = vmatmul.mubr.msk.f32.vlgmr.msra.gmra.mxu1 %vm61_vm1, %v7767_v17  ;;  %v4907_v35 = vpop.permute.xlu0 %4906  ;;  %7769 = vmatmul.mubr.msk.f32.vlgmr.msra.gmra.mxu0 %vm61_vm1, %v7767_v17  ;;  %v978_v36 = vadd.f32 %v833_v34, %v733_v15 }
 0x159   :  { %v4909_v37 = vpop.permute.xlu1 %4908  ;;  %4994 = vmatprep.mubr.f32.mxu0 %v8026_v2  ;;  %5065 = vmatprep.mubr.f32.mxu1 %v8026_v2  ;;  %v973_v38 = vpop.f32.mrf.mxu1 }
 0x15a   :  { %v4918_v39 = vsel %vm4916_vm15, %v4907_v35, %v4909_v37  ;;  %v981_v40 = vadd.f32 %v973_v38, %v736_v24  ;;  %v902_v41 = vpop.f32.mrf.mxu0 }
 0x15b   :  { %4960 = vmatprep.subr.mxu0 %v4918_v39  ;;  %v979_v42 = vadd.f32 %v902_v41, %v734_v21  ;;  %v7886_v43 = vpop.f32.mrf.mxu1 }
 0x15c   :  { %v4905_v44 = vpop.permute.xlu0 %4904  ;;  %v904_v46 = vpop.f32.mrf.mxu0 }
 0x15d   :  { %v4917_v47 = vsel %vm4916_vm15, %v4905_v44, %v4907_v35  ;;  %v4911_v48 = vpop.permute.xlu1 %4910  ;;  %v980_v0 = vadd.f32 %v904_v46, %v735_v26 }
 0x15e   :  { %4961 = vmatpush1.msra.mxu0 %v4917_v47  ;;  %v4919_v51 = vsel %vm4916_vm15, %v4909_v37, %v4911_v48 }
 0x15f   :  { %7772 = vmatmul.mubr.msk.f32.vlgmr.msra.gmra.mxu0 %vm61_vm1, %v7771_v45  ;;  %7967 = vmatprep.subr.mxu0 %v8026_v2 }
 0x160   :  { %v4913_v3 = vpop.permute.xlu0 %4912  ;;  %7969 = vmatprep.mubr.msk.f32.mxu0 %vm8038_vm2, %v8026_v2  ;;  %v1076_v49 = vpop.f32.mrf.mxu0 }
 0x161   :  { %v4915_v1 = vpop.permute.xlu1 %4914  ;;  %v4920_v4 = vsel %vm4916_vm15, %v4911_v48, %v4913_v3  ;;  %v1222_v50 = vadd.f32 %v1076_v49, %v977_v33 }
 0x162   :  { %v4921_v52 = vsel %vm4916_vm15, %v4913_v3, %v4915_v1  ;;  %5031 = vmatprep.subr.mxu1 %v4920_v4  ;;  %v1078_v53 = vpop.f32.mrf.mxu0  ;;  %v7783_v1 = vld [vmem:[%s8980_s1 + $0xb8] sm:$0xff] }
 0x163   :  { %7968 = vmatpush3.msra.mxu0 %v4921_v52  ;;  %5032 = vmatpush1.msra.mxu1 %v4919_v51  ;;  %v1223_v5 = vadd.f32 %v1078_v53, %v978_v36 }
 0x164   :  { %7970 = vmatmul.mubr.msk.f32.vlgmr.msra.gmra.mxu0 %vm61_vm1, %v7771_v45  ;;  %v5152_v6 = vpop.permute.xlu0 %5151  ;;  %7773 = vmatmul.mubr.msk.f32.vlgmr.msra.gmra.mxu1 %vm61_vm1, %v7771_v45  ;;  %v1218_v54 = vpop.f32.mrf.mxu0 }
 0x165   :  { %v5154_v55 = vpop.permute.xlu1 %5153  ;;  %5239 = vmatprep.mubr.f32.mxu1 %v8026_v2  ;;  %5310 = vmatprep.mubr.f32.mxu0 %v8026_v2  ;;  %v1147_v56 = vpop.f32.mrf.mxu1  ;;  %v1226_v57 = vadd.f32 %v1218_v54, %v981_v40 }
 0x166   :  { %v5163_v58 = vsel %vm5161_vm4, %v5152_v6, %v5154_v55  ;;  %v1224_v59 = vadd.f32 %v1147_v56, %v979_v42  ;;  %v7891_v60 = vpop.f32.mrf.mxu0 }
 0x167   :  { %5205 = vmatprep.subr.mxu1 %v5163_v58  ;;  %v1149_v61 = vpop.f32.mrf.mxu1 }
 0x168   :  { %v5150_v62 = vpop.permute.xlu0 %5149  ;;  %v1225_v7 = vadd.f32 %v1149_v61, %v980_v0 }
 0x169   :  { %v5162_v8 = vsel %vm5161_vm4, %v5150_v62, %v5152_v6  ;;  %v5156_v9 = vpop.permute.xlu1 %5155 }
 0x16a   :  { %5206 = vmatpush1.msra.mxu1 %v5162_v8  ;;  %v5164_v15 = vsel %vm5161_vm4, %v5154_v55, %v5156_v9 }
 0x16b   :  { %7776 = vmatmul.mubr.msk.f32.vlgmr.msra.gmra.mxu1 %vm61_vm1, %v7775_v63  ;;  %7972 = vmatprep.subr.mxu1 %v8026_v2 }
 0x16c   :  { %v5158_v10 = vpop.permute.xlu0 %5157  ;;  %7974 = vmatprep.mubr.msk.f32.mxu1 %vm8038_vm2, %v8026_v2  ;;  %v1321_v11 = vpop.f32.mrf.mxu1 }
 0x16d   :  { %v5160_v12 = vpop.permute.xlu1 %5159  ;;  %v5165_v13 = vsel %vm5161_vm4, %v5156_v9, %v5158_v10  ;;  %v1467_v14 = vadd.f32 %v1321_v11, %v1222_v50 }
 0x16e   :  { %v5166_v16 = vsel %vm5161_vm4, %v5158_v10, %v5160_v12  ;;  %5276 = vmatprep.subr.mxu0 %v5165_v13  ;;  %v1323_v17 = vpop.f32.mrf.mxu1  ;;  %v7787_v12 = vld [vmem:[%s8980_s1 + $0xc0] sm:$0xff] }
 0x16f   :  { %7973 = vmatpush3.msra.mxu1 %v5166_v16  ;;  %5277 = vmatpush1.msra.mxu0 %v5164_v15  ;;  %v1468_v18 = vadd.f32 %v1323_v17, %v1223_v5 }
 0x170   :  { %7975 = vmatmul.mubr.msk.f32.vlgmr.msra.gmra.mxu1 %vm61_vm1, %v7775_v63  ;;  %v5397_v19 = vpop.permute.xlu0 %5396  ;;  %7777 = vmatmul.mubr.msk.f32.vlgmr.msra.gmra.mxu0 %vm61_vm1, %v7775_v63  ;;  %v1463_v20 = vpop.f32.mrf.mxu1 }
 0x171   :  { %v5399_v21 = vpop.permute.xlu1 %5398  ;;  %5484 = vmatprep.mubr.f32.mxu0 %v8026_v2  ;;  %5555 = vmatprep.mubr.f32.mxu1 %v8026_v2  ;;  %v1471_v22 = vadd.f32 %v1463_v20, %v1226_v57  ;;  %v1392_v23 = vpop.f32.mrf.mxu0 }
 0x172   :  { %v5408_v24 = vsel %vm5406_vm5, %v5397_v19, %v5399_v21  ;;  %v1469_v25 = vadd.f32 %v1392_v23, %v1224_v59  ;;  %v7896_v26 = vpop.f32.mrf.mxu1 }
 0x173   :  { %5450 = vmatprep.subr.mxu0 %v5408_v24  ;;  %v1394_v27 = vpop.f32.mrf.mxu0 }
 0x174   :  { %v5395_v28 = vpop.permute.xlu0 %5394  ;;  %v1470_v30 = vadd.f32 %v1394_v27, %v1225_v7 }
 0x175   :  { %v5407_v31 = vsel %vm5406_vm5, %v5395_v28, %v5397_v19  ;;  %v5401_v32 = vpop.permute.xlu1 %5400 }
 0x176   :  { %5451 = vmatpush1.msra.mxu0 %v5407_v31  ;;  %v5409_v38 = vsel %vm5406_vm5, %v5399_v21, %v5401_v32 }
 0x177   :  { %7780 = vmatmul.mubr.msk.f32.vlgmr.msra.gmra.mxu0 %vm61_vm1, %v7779_v29  ;;  %7977 = vmatprep.subr.mxu0 %v8026_v2 }
 0x178   :  { %v5403_v33 = vpop.permute.xlu0 %5402  ;;  %7979 = vmatprep.mubr.msk.f32.mxu0 %vm8038_vm2, %v8026_v2  ;;  %v1566_v34 = vpop.f32.mrf.mxu0 }
 0x179   :  { %v5405_v35 = vpop.permute.xlu1 %5404  ;;  %v5410_v36 = vsel %vm5406_vm5, %v5401_v32, %v5403_v33  ;;  %v1712_v37 = vadd.f32 %v1566_v34, %v1467_v14 }
 0x17a   :  { %v5411_v39 = vsel %vm5406_vm5, %v5403_v33, %v5405_v35  ;;  %5521 = vmatprep.subr.mxu1 %v5410_v36  ;;  %v1568_v40 = vpop.f32.mrf.mxu0 }
 0x17b   :  { %7978 = vmatpush3.msra.mxu0 %v5411_v39  ;;  %5522 = vmatpush1.msra.mxu1 %v5409_v38  ;;  %v1713_v41 = vadd.f32 %v1568_v40, %v1468_v18 }
 0x17c   :  { %7980 = vmatmul.mubr.msk.f32.vlgmr.msra.gmra.mxu0 %vm61_vm1, %v7779_v29  ;;  %v5642_v42 = vpop.permute.xlu0 %5641  ;;  %7781 = vmatmul.mubr.msk.f32.vlgmr.msra.gmra.mxu1 %vm61_vm1, %v7779_v29  ;;  %v1708_v43 = vpop.f32.mrf.mxu0 }
 0x17d   :  { %v5644_v44 = vpop.permute.xlu1 %5643  ;;  %5729 = vmatprep.mubr.f32.mxu1 %v8026_v2  ;;  %5800 = vmatprep.mubr.f32.mxu0 %v8026_v2  ;;  %v1637_v45 = vpop.f32.mrf.mxu1  ;;  %v1716_v46 = vadd.f32 %v1708_v43, %v1471_v22 }
 0x17e   :  { %v5653_v47 = vsel %vm5651_vm9, %v5642_v42, %v5644_v44  ;;  %v1714_v48 = vadd.f32 %v1637_v45, %v1469_v25  ;;  %v7901_v0 = vpop.f32.mrf.mxu0 }
 0x17f   :  { %5695 = vmatprep.subr.mxu1 %v5653_v47  ;;  %v1639_v3 = vpop.f32.mrf.mxu1 }
 0x180   :  { %v5640_v49 = vpop.permute.xlu0 %5639  ;;  %v1715_v4 = vadd.f32 %v1639_v3, %v1470_v30 }
 0x181   :  { %v5652_v50 = vsel %vm5651_vm9, %v5640_v49, %v5642_v42  ;;  %v5646_v51 = vpop.permute.xlu1 %5645 }
 0x182   :  { %5696 = vmatpush1.msra.mxu1 %v5652_v50  ;;  %v5654_v55 = vsel %vm5651_vm9, %v5644_v44, %v5646_v51 }
 0x183   :  { %7784 = vmatmul.mubr.msk.f32.vlgmr.msra.gmra.mxu1 %vm61_vm1, %v7783_v1  ;;  %7982 = vmatprep.subr.mxu1 %v8026_v2 }
 0x184   :  { %v5648_v52 = vpop.permute.xlu0 %5647  ;;  %7984 = vmatprep.mubr.msk.f32.mxu1 %vm8038_vm2, %v8026_v2  ;;  %v1811_v53 = vpop.f32.mrf.mxu1 }
 0x185   :  { %v5650_v5 = vpop.permute.xlu1 %5649  ;;  %v5655_v6 = vsel %vm5651_vm9, %v5646_v51, %v5648_v52  ;;  %v1957_v54 = vadd.f32 %v1811_v53, %v1712_v37 }
 0x186   :  { %v5656_v56 = vsel %vm5651_vm9, %v5648_v52, %v5650_v5  ;;  %5766 = vmatprep.subr.mxu0 %v5655_v6  ;;  %v1813_v57 = vpop.f32.mrf.mxu1 }
 0x187   :  { %7983 = vmatpush3.msra.mxu1 %v5656_v56  ;;  %5767 = vmatpush1.msra.mxu0 %v5654_v55  ;;  %v1958_v58 = vadd.f32 %v1813_v57, %v1713_v41 }
 0x188   :  { %7985 = vmatmul.mubr.msk.f32.vlgmr.msra.gmra.mxu1 %vm61_vm1, %v7783_v1  ;;  %v5887_v59 = vpop.permute.xlu0 %5886  ;;  %7785 = vmatmul.mubr.msk.f32.vlgmr.msra.gmra.mxu0 %vm61_vm1, %v7783_v1  ;;  %v1953_v60 = vpop.f32.mrf.mxu1 }
 0x189   :  { %v5889_v61 = vpop.permute.xlu1 %5888  ;;  %5974 = vmatprep.mubr.f32.mxu0 %v8026_v2  ;;  %6045 = vmatprep.mubr.f32.mxu1 %v8026_v2  ;;  %v1961_v62 = vadd.f32 %v1953_v60, %v1716_v46  ;;  %v1882_v63 = vpop.f32.mrf.mxu0 }
 0x18a   :  { %v5898_v7 = vsel %vm5896_vm10, %v5887_v59, %v5889_v61  ;;  %v1959_v8 = vadd.f32 %v1882_v63, %v1714_v48  ;;  %v7906_v9 = vpop.f32.mrf.mxu1 }
 0x18b   :  { %5940 = vmatprep.subr.mxu0 %v5898_v7  ;;  %v1884_v10 = vpop.f32.mrf.mxu0 }
 0x18c   :  { %v5885_v11 = vpop.permute.xlu0 %5884  ;;  %v1960_v13 = vadd.f32 %v1884_v10, %v1715_v4 }
 0x18d   :  { %v5897_v14 = vsel %vm5896_vm10, %v5885_v11, %v5887_v59  ;;  %v5891_v15 = vpop.permute.xlu1 %5890 }
 0x18e   :  { %5941 = vmatpush1.msra.mxu0 %v5897_v14  ;;  %v5899_v21 = vsel %vm5896_vm10, %v5889_v61, %v5891_v15 }
 0x18f   :  { %7788 = vmatmul.mubr.msk.f32.vlgmr.msra.gmra.mxu0 %vm61_vm1, %v7787_v12  ;;  %7987 = vmatprep.subr.mxu0 %v8026_v2 }
 0x190   :  { %v5893_v16 = vpop.permute.xlu0 %5892  ;;  %7989 = vmatprep.mubr.msk.f32.mxu0 %vm8038_vm2, %v8026_v2  ;;  %v2056_v17 = vpop.f32.mrf.mxu0 }
 0x191   :  { %v5895_v18 = vpop.permute.xlu1 %5894  ;;  %v5900_v19 = vsel %vm5896_vm10, %v5891_v15, %v5893_v16  ;;  %v2202_v20 = vadd.f32 %v2056_v17, %v1957_v54 }
 0x192   :  { %v5901_v22 = vsel %vm5896_vm10, %v5893_v16, %v5895_v18  ;;  %6011 = vmatprep.subr.mxu1 %v5900_v19  ;;  %v2058_v23 = vpop.f32.mrf.mxu0 }
 0x193   :  { %7988 = vmatpush3.msra.mxu0 %v5901_v22  ;;  %6012 = vmatpush1.msra.mxu1 %v5899_v21  ;;  %v2203_v24 = vadd.f32 %v2058_v23, %v1958_v58 }
 0x194   :  { %7990 = vmatmul.mubr.msk.f32.vlgmr.msra.gmra.mxu0 %vm61_vm1, %v7787_v12  ;;  %7789 = vmatmul.mubr.msk.f32.vlgmr.msra.gmra.mxu1 %vm61_vm1, %v7787_v12  ;;  %v2198_v25 = vpop.f32.mrf.mxu0 }
 0x195   :  { %v2127_v26 = vpop.f32.mrf.mxu1  ;;  %v2206_v27 = vadd.f32 %v2198_v25, %v1961_v62  ;;  %6268 = vmatprep.mubr.f32.mxu1 %v8026_v2  ;;  %6339 = vmatprep.mubr.f32.mxu0 %v8026_v2 }
 0x196   :  { %v2204_v28 = vadd.f32 %v2127_v26, %v1959_v8  ;;  %v7911_v29 = vpop.f32.mrf.mxu0 }
 0x197   :  { %v2129_v30 = vpop.f32.mrf.mxu1 }
 0x198   :  { %v2205_v31 = vadd.f32 %v2129_v30, %v1960_v13 }
 0x19c   :  { %v2301_v32 = vpop.f32.mrf.mxu1 }
 0x19d   :  { %v2447_v33 = vadd.f32 %v2301_v32, %v2202_v20 }
 0x19e   :  { %v2303_v34 = vpop.f32.mrf.mxu1 }
 0x19f   :  { %v2448_v35 = vadd.f32 %v2303_v34, %v2203_v24 }
 0x1a0   :  { %v2443_v36 = vpop.f32.mrf.mxu1 }
 0x1a1   :  { %v2451_v37 = vadd.f32 %v2443_v36, %v2206_v27  ;;  %v2372_v38 = vpop.f32.mrf.mxu0 }
 0x1a2   :  { %v2449_v39 = vadd.f32 %v2372_v38, %v2204_v28  ;;  %v7916_v40 = vpop.f32.mrf.mxu1 }
 0x1a3   :  { %v2374_v41 = vpop.f32.mrf.mxu0 }
 0x1a4   :  { %v2450_v42 = vadd.f32 %v2374_v41, %v2205_v31 }
 0x1a8   :  { %v2546_v43 = vpop.f32.mrf.mxu0 }
 0x1a9   :  { %v2692_v44 = vadd.f32 %v2546_v43, %v2447_v33 }
 0x1aa   :  { %v2548_v45 = vpop.f32.mrf.mxu0 }
 0x1ab   :  { %v2693_v46 = vadd.f32 %v2548_v45, %v2448_v35 }
 0x1ac   :  { %v2688_v47 = vpop.f32.mrf.mxu0 }
 0x1ad   :  { %v2617_v48 = vpop.f32.mrf.mxu1  ;;  %v2696_v0 = vadd.f32 %v2688_v47, %v2451_v37 }
 0x1ae   :  { %v2694_v3 = vadd.f32 %v2617_v48, %v2449_v39  ;;  %v7921_v49 = vpop.f32.mrf.mxu0 }
 0x1af   :  { %v2619_v1 = vpop.f32.mrf.mxu1 }
 0x1b0   :  { %v2695_v4 = vadd.f32 %v2619_v1, %v2450_v42 }
 0x1b4   :  { %v2791_v50 = vpop.f32.mrf.mxu1 }
 0x1b5   :  { %v2937_v51 = vadd.f32 %v2791_v50, %v2692_v44 }
 0x1b6   :  { %v2793_v52 = vpop.f32.mrf.mxu1 }
 0x1b7   :  { %v2938_v53 = vadd.f32 %v2793_v52, %v2693_v46 }
 0x1b8   :  { %v2933_v5 = vpop.f32.mrf.mxu1 }
 0x1b9   :  { %v2941_v6 = vadd.f32 %v2933_v5, %v2696_v0  ;;  %v2862_v54 = vpop.f32.mrf.mxu0 }
 0x1ba   :  { %v2939_v55 = vadd.f32 %v2862_v54, %v2694_v3  ;;  %v7926_v56 = vpop.f32.mrf.mxu1 }
 0x1bb   :  { %v2864_v57 = vpop.f32.mrf.mxu0 }
 0x1bc   :  { %v2940_v58 = vadd.f32 %v2864_v57, %v2695_v4 }
 0x1c0   :  { %v3036_v59 = vpop.f32.mrf.mxu0 }
 0x1c1   :  { %v3182_v60 = vadd.f32 %v3036_v59, %v2937_v51 }
 0x1c2   :  { %v3038_v61 = vpop.f32.mrf.mxu0 }
 0x1c3   :  { %v3183_v62 = vadd.f32 %v3038_v61, %v2938_v53 }
 0x1c4   :  { %v3178_v63 = vpop.f32.mrf.mxu0 }
 0x1c5   :  { %v3107_v7 = vpop.f32.mrf.mxu1  ;;  %v3186_v8 = vadd.f32 %v3178_v63, %v2941_v6 }
 0x1c6   :  { %v3184_v9 = vadd.f32 %v3107_v7, %v2939_v55  ;;  %v7931_v10 = vpop.f32.mrf.mxu0 }
 0x1c7   :  { %v3109_v11 = vpop.f32.mrf.mxu1 }
 0x1c8   :  { %v3185_v12 = vadd.f32 %v3109_v11, %v2940_v58 }
 0x1cc   :  { %v3281_v13 = vpop.f32.mrf.mxu1 }
 0x1cd   :  { %v3427_v14 = vadd.f32 %v3281_v13, %v3182_v60 }
 0x1ce   :  { %v3283_v15 = vpop.f32.mrf.mxu1 }
 0x1cf   :  { %v3428_v16 = vadd.f32 %v3283_v15, %v3183_v62 }
 0x1d0   :  { %v3423_v17 = vpop.f32.mrf.mxu1 }
 0x1d1   :  { %v3431_v18 = vadd.f32 %v3423_v17, %v3186_v8  ;;  %v3352_v19 = vpop.f32.mrf.mxu0 }
 0x1d2   :  { %v3429_v20 = vadd.f32 %v3352_v19, %v3184_v9  ;;  %v7936_v21 = vpop.f32.mrf.mxu1 }
 0x1d3   :  { %v3354_v22 = vpop.f32.mrf.mxu0 }
 0x1d4   :  { %v3430_v23 = vadd.f32 %v3354_v22, %v3185_v12 }
 0x1d8   :  { %v3526_v24 = vpop.f32.mrf.mxu0 }
 0x1d9   :  { %v3672_v25 = vadd.f32 %v3526_v24, %v3427_v14 }
 0x1da   :  { %v3528_v26 = vpop.f32.mrf.mxu0 }
 0x1db   :  { %v3673_v27 = vadd.f32 %v3528_v26, %v3428_v16 }
 0x1dc   :  { %v3668_v28 = vpop.f32.mrf.mxu0 }
 0x1dd   :  { %v3597_v29 = vpop.f32.mrf.mxu1  ;;  %v3676_v30 = vadd.f32 %v3668_v28, %v3431_v18 }
 0x1de   :  { %v3674_v31 = vadd.f32 %v3597_v29, %v3429_v20  ;;  %v7941_v32 = vpop.f32.mrf.mxu0 }
 0x1df   :  { %v3599_v33 = vpop.f32.mrf.mxu1 }
 0x1e0   :  { %v3675_v34 = vadd.f32 %v3599_v33, %v3430_v23 }
 0x1e3   :  { %v3771_v35 = vpop.f32.mrf.mxu1 }
 0x1e4   :  { %v3917_v36 = vadd.f32 %v3771_v35, %v3672_v25 }
 0x1e5   :  { %v3773_v37 = vpop.f32.mrf.mxu1 }
 0x1e6   :  { %v3918_v38 = vadd.f32 %v3773_v37, %v3673_v27 }
 0x1e8   :  { %v3913_v39 = vpop.f32.mrf.mxu1  ;;  %v3842_v40 = vpop.f32.mrf.mxu0 }
 0x1e9   :  { %v3921_v41 = vadd.f32 %v3913_v39, %v3676_v30  ;;  %v3919_v42 = vadd.f32 %v3842_v40, %v3674_v31 }
 0x1ea   :  { %v3844_v43 = vpop.f32.mrf.mxu0  ;;  %v7946_v44 = vpop.f32.mrf.mxu1 }
 0x1eb   :  { %v3920_v45 = vadd.f32 %v3844_v43, %v3675_v34 }
 0x1ef   :  { %v4016_v46 = vpop.f32.mrf.mxu0 }
 0x1f0   :  { %v4162_v47 = vadd.f32 %v4016_v46, %v3917_v36 }
 0x1f1   :  { %v4018_v48 = vpop.f32.mrf.mxu0 }
 0x1f2   :  { %v4163_v0 = vadd.f32 %v4018_v48, %v3918_v38  ;;  %v6145_v48 = vlaneseq }
 0x1f4   :  { %v4158_v3 = vpop.f32.mrf.mxu0  ;;  %v4087_v49 = vpop.f32.mrf.mxu1 }
 0x1f5   :  { %v4166_v1 = vadd.f32 %v4158_v3, %v3921_v41  ;;  %v4164_v4 = vadd.f32 %v4087_v49, %v3919_v42 }
 0x1f6   :  { %v4089_v50 = vpop.f32.mrf.mxu1  ;;  %v7951_v51 = vpop.f32.mrf.mxu0 }
 0x1f7   :  { %v4165_v52 = vadd.f32 %v4089_v50, %v3920_v45  ;;  %v8741_v51 = vshrl.u32 %v6145_v48, 7  ;;  %v7674_v48 = vld [vmem:[%s8983_s4] sm:$0xff] }
 0x1fb   :  { %v4261_v53 = vpop.f32.mrf.mxu1 }
 0x1fc   :  { %v4407_v5 = vadd.f32 %v4261_v53, %v4162_v47 }
 0x1fd   :  { %v4263_v6 = vpop.f32.mrf.mxu1 }
 0x1fe   :  { %v4408_v54 = vadd.f32 %v4263_v6, %v4163_v0 }
 0x200   :  { %v4403_v55 = vpop.f32.mrf.mxu1  ;;  %v4332_v56 = vpop.f32.mrf.mxu0 }
 0x201   :  { %v4411_v57 = vadd.f32 %v4403_v55, %v4166_v1  ;;  %v4409_v58 = vadd.f32 %v4332_v56, %v4164_v4  ;;  %v6147_v56 = vsub.s32 0, %v8741_v51 }
 0x202   :  { %v4334_v59 = vpop.f32.mrf.mxu0  ;;  %v7956_v60 = vpop.f32.mrf.mxu1 }
 0x203   :  { %v4410_v61 = vadd.f32 %v4334_v59, %v4165_v52  ;;  %v8747_v59 = vld [vmem:[%s8982_s5] sm:$0x1f] }
 0x207   :  { %v4506_v62 = vpop.f32.mrf.mxu0 }
 0x208   :  { %v4652_v45 = vadd.f32 %v4506_v62, %v4407_v5 }
 0x209   :  { %v4508_v63 = vpop.f32.mrf.mxu0 }
 0x20a   :  { %v4653_v7 = vadd.f32 %v4508_v63, %v4408_v54  ;;  %v6148_v63 = vrot.slane %v8747_v59, %v6147_v56 }
 0x20c   :  { %v4648_v8 = vpop.f32.mrf.mxu0  ;;  %v4577_v9 = vpop.f32.mrf.mxu1 }
 0x20d   :  { %v4656_v10 = vadd.f32 %v4648_v8, %v4411_v57  ;;  %v4654_v49 = vadd.f32 %v4577_v9, %v4409_v58  ;;  %v6131_v58 = vpop.permute.xlu0 %6130  ;;  %v6155_v9 = vsub.s32 2, %v8741_v51 }
 0x20e   :  { %v4579_v11 = vpop.f32.mrf.mxu1  ;;  %v7961_v12 = vpop.f32.mrf.mxu0 }
 0x20f   :  { %v4655_v13 = vadd.f32 %v4579_v11, %v4410_v61 }
 0x213   :  { %v4751_v14 = vpop.f32.mrf.mxu1 }
 0x214   :  { %v4897_v47 = vadd.f32 %v4751_v14, %v4652_v45  ;;  %v6163_v45 = vsub.s32 4, %v8741_v51 }
 0x215   :  { %v4753_v15 = vpop.f32.mrf.mxu1 }
 0x216   :  { %v8733_v16 = vadd.f32 %v4753_v15, %v4653_v7 }
 0x218   :  { %v4893_v17 = vpop.f32.mrf.mxu1  ;;  %v4822_v18 = vpop.f32.mrf.mxu0 }
 0x219   :  { %v4901_v19 = vadd.f32 %v4893_v17, %v4656_v10  ;;  %v4899_v52 = vadd.f32 %v4822_v18, %v4654_v49  ;;  %v6156_v18 = vrot.slane %v8747_v59, %v6155_v9 }
 0x21a   :  { %v4824_v20 = vpop.f32.mrf.mxu0  ;;  %v7966_v21 = vpop.f32.mrf.mxu1 }
 0x21b   :  { %v8735_v22 = vadd.f32 %v4824_v20, %v4655_v13 }
 0x21f   :  { %v4996_v23 = vpop.f32.mrf.mxu0 }
 0x220   :  { %v5142_v0 = vadd.f32 %v4996_v23, %v4897_v47 }
 0x221   :  { %v4998_v24 = vpop.f32.mrf.mxu0 }
 0x222   :  { %v5143_v20 = vadd.f32 %v4998_v24, %v8733_v16 }
 0x224   :  { %v5138_v25 = vpop.f32.mrf.mxu0  ;;  %v5067_v27 = vpop.f32.mrf.mxu1 }
 0x225   :  { %v5146_v26 = vadd.f32 %v5138_v25, %v4901_v19  ;;  %v5144_v6 = vadd.f32 %v5067_v27, %v4899_v52 }
 0x226   :  { %v7971_v28 = vpop.f32.mrf.mxu0  ;;  %v5069_v29 = vpop.f32.mrf.mxu1 }
 0x227   :  { %v5145_v21 = vadd.f32 %v5069_v29, %v8735_v22  ;;  %v6151_v29 = vsub.s32 1, %v8741_v51 }
 0x22b   :  { %v5241_v30 = vpop.f32.mrf.mxu1 }
 0x22c   :  { %v5387_v4 = vadd.f32 %v5241_v30, %v5142_v0 }
 0x22d   :  { %v5243_v31 = vpop.f32.mrf.mxu1 }
 0x22e   :  { %v5388_v25 = vadd.f32 %v5243_v31, %v5143_v20 }
 0x230   :  { %v5383_v32 = vpop.f32.mrf.mxu1  ;;  %v5312_v34 = vpop.f32.mrf.mxu0 }
 0x231   :  { %v5391_v33 = vadd.f32 %v5383_v32, %v5146_v26  ;;  %v5389_v5 = vadd.f32 %v5312_v34, %v5144_v6  ;;  %v6159_v34 = vsub.s32 3, %v8741_v51 }
 0x232   :  { %v7976_v35 = vpop.f32.mrf.mxu1  ;;  %v5314_v36 = vpop.f32.mrf.mxu0 }
 0x233   :  { %v5390_v26 = vadd.f32 %v5314_v36, %v5145_v21  ;;  %v6152_v36 = vrot.slane %v8747_v59, %v6151_v29  ;;  %v7802_v21 = vld [vmem:[%s8984_s3 + $0x20] sm:$0xff] }
 0x237   :  { %v5486_v37 = vpop.f32.mrf.mxu0 }
 0x238   :  { %v5632_v53 = vadd.f32 %v5486_v37, %v5387_v4 }
 0x239   :  { %v5488_v38 = vpop.f32.mrf.mxu0 }
 0x23a   :  { %v5633_v27 = vadd.f32 %v5488_v38, %v5388_v25  ;;  %v6160_v38 = vrot.slane %v8747_v59, %v6159_v34 }
 0x23c   :  { %v5628_v39 = vpop.f32.mrf.mxu0  ;;  %v5557_v41 = vpop.f32.mrf.mxu1 }
 0x23d   :  { %v8737_v40 = vadd.f32 %v5628_v39, %v5391_v33  ;;  %v5634_v61 = vadd.f32 %v5557_v41, %v5389_v5 }
 0x23e   :  { %v7981_v42 = vpop.f32.mrf.mxu0  ;;  %v5559_v43 = vpop.f32.mrf.mxu1 }
 0x23f   :  { %v5635_v28 = vadd.f32 %v5559_v43, %v5390_v26 }
 0x243   :  { %v5731_v44 = vpop.f32.mrf.mxu1 }
 0x244   :  { %v5877_v55 = vadd.f32 %v5731_v44, %v5632_v53 }
 0x245   :  { %v5733_v46 = vpop.f32.mrf.mxu1 }
 0x246   :  { %v5878_v32 = vadd.f32 %v5733_v46, %v5633_v27  ;;  %v6164_v46 = vrot.slane %v8747_v59, %v6163_v45  ;;  %v7791_v59 = vld [vmem:[%s8984_s3 + $0x8] sm:$0xff] }
 0x248   :  { %v8739_v3 = vpop.f32.mrf.mxu1  ;;  %v5802_v1 = vpop.f32.mrf.mxu0 }
 0x249   :  { %v5879_v8 = vadd.f32 %v5802_v1, %v5634_v61  ;;  %v5881_v42 = vadd.f32 %v8739_v3, %v8737_v40 }
 0x24a   :  { %v7986_v50 = vpop.f32.mrf.mxu1  ;;  %v5804_v54 = vpop.f32.mrf.mxu0 }
 0x24b   :  { %v5880_v33 = vadd.f32 %v5804_v54, %v5635_v28 }
 0x24f   :  { %v5976_v57 = vpop.f32.mrf.mxu0 }
 0x250   :  { %v6122_v60 = vadd.f32 %v5976_v57, %v5877_v55 }
 0x251   :  { %v5978_v62 = vpop.f32.mrf.mxu0 }
 0x252   :  { %v6133_v7 = vadd.f32 %v6131_v58, %v6122_v60  ;;  %v6123_v16 = vadd.f32 %v5978_v62, %v5878_v32  ;;  %v6175_v62 = vld [vmem:[%s8984_s3] sm:$0xff] }
 0x254   :  { %v6138_v10 = vadd.f32 0.5, %v6133_v7  ;;  %v6118_v11 = vpop.f32.mrf.mxu0  ;;  %v6047_v12 = vpop.f32.mrf.mxu1  ;;  %v6134_v24 = vadd.f32 %v6131_v58, %v6123_v16 }
 0x255   :  { %v6124_v13 = vadd.f32 %v6047_v12, %v5879_v8  ;;  %v6126_v43 = vadd.f32 %v6118_v11, %v5881_v42 }
 0x256   :  { %v8751_v14 = vmul.f32 %v6148_v63, %v6138_v10  ;;  %v7991_v15 = vpop.f32.mrf.mxu0  ;;  %v6049_v30 = vpop.f32.mrf.mxu1  ;;  %v6139_v35 = vadd.f32 0.5, %v6134_v24  ;;  %v7796_v10 = vld [vmem:[%s8984_s3 + $0x10] sm:$0xff] }
 0x257   :  { %v6135_v17 = vadd.f32 %v6131_v58, %v6124_v13  ;;  %v6125_v22 = vadd.f32 %v6049_v30, %v5880_v33  ;;  %v6137_v44 = vadd.f32 %v6131_v58, %v6126_v43  ;;  %v7799_v15 = vld [vmem:[%s8984_s3 + $0x18] sm:$0xff]  ;;  %v7805_v30 = vld [vmem:[%s8984_s3 + $0x28] sm:$0xff] }
 0x258   :  { %6183 = vrot.lane.b32.xlu0 %v8751_v14, %s8027_s25  ;;  %v6171_v39 = vmul.f32 %v6152_v36, %v6139_v35 }
 0x259   :  { %v6140_v19 = vadd.f32 0.5, %v6135_v17  ;;  %v6136_v31 = vadd.f32 %v6131_v58, %v6125_v22  ;;  %v6142_v40 = vadd.f32 0.5, %v6137_v44 }
 0x25b   :  { %v8758_v23 = vmul.f32 %v6156_v18, %v6140_v19  ;;  %v6141_v37 = vadd.f32 0.5, %v6136_v31  ;;  %v6174_v47 = vmul.f32 %v6164_v46, %v6142_v40  ;;  %v7811_v46 = vld [vmem:[%s8984_s3 + $0x38] sm:$0xff] }
 0x25d   :  { %6497 = vrot.lane.b32.xlu0 %v8758_v23, %s8028_s10  ;;  %6187 = vrot.lane.b32.xlu1 %v8758_v23, %s8027_s25  ;;  %v8784_v41 = vmul.f32 %v6160_v38, %v6141_v37  ;;  %v7808_v37 = vld [vmem:[%s8984_s3 + $0x30] sm:$0xff] }
 0x261   :  { %6662 = vrot.lane.b32.xlu0 %v8751_v14, %s8031_s13  ;;  %6493 = vrot.lane.b32.xlu1 %v8751_v14, %s8028_s10 }
 0x265   :  { %6835 = vrot.lane.b32.xlu0 %v8758_v23, %s8032_s14  ;;  %6666 = vrot.lane.b32.xlu1 %v8758_v23, %s8031_s13 }
 0x269   :  { %7000 = vrot.lane.b32.xlu0 %v8751_v14, %s8033_s15  ;;  %6831 = vrot.lane.b32.xlu1 %v8751_v14, %s8032_s14 }
 0x26d   :  { %7173 = vrot.lane.b32.xlu0 %v8758_v23, %s8036_s18  ;;  %7004 = vrot.lane.b32.xlu1 %v8758_v23, %s8033_s15 }
 0x271   :  { %6185 = vrot.lane.b32.xlu1 %v6171_v39, %s8027_s25  ;;  %6189 = vrot.lane.b32.xlu0 %v8784_v41, %s8027_s25 }
 0x275   :  { %6495 = vrot.lane.b32.xlu1 %v6171_v39, %s8028_s10  ;;  %6664 = vrot.lane.b32.xlu0 %v6171_v39, %s8031_s13 }
 0x279   :  { %6499 = vrot.lane.b32.xlu1 %v8784_v41, %s8028_s10  ;;  %6668 = vrot.lane.b32.xlu0 %v8784_v41, %s8031_s13 }
 0x27d   :  { %6833 = vrot.lane.b32.xlu1 %v6171_v39, %s8032_s14  ;;  %7002 = vrot.lane.b32.xlu0 %v6171_v39, %s8033_s15 }
 0x281   :  { %6837 = vrot.lane.b32.xlu1 %v8784_v41, %s8032_s14  ;;  %7006 = vrot.lane.b32.xlu0 %v8784_v41, %s8033_s15 }
 0x285   :  { %7171 = vrot.lane.b32.xlu1 %v6171_v39, %s8036_s18  ;;  %7340 = vrot.lane.b32.xlu0 %v6171_v39, %s8037_s21 }
 0x289   :  { %6501 = vrot.lane.b32.xlu0 %v6174_v47, %s8028_s10  ;;  %6191 = vrot.lane.b32.xlu1 %v6174_v47, %s8027_s25 }
 0x28d   :  { %7344 = vrot.lane.b32.xlu0 %v8784_v41, %s8037_s21  ;;  %7175 = vrot.lane.b32.xlu1 %v8784_v41, %s8036_s18 }
 0x291   :  { %6839 = vrot.lane.b32.xlu0 %v6174_v47, %s8032_s14  ;;  %7169 = vrot.lane.b32.xlu1 %v8751_v14, %s8036_s18 }
 0x295   :  { %7338 = vrot.lane.b32.xlu0 %v8751_v14, %s8037_s21  ;;  %6670 = vrot.lane.b32.xlu1 %v6174_v47, %s8031_s13 }
 0x299   :  { %7177 = vrot.lane.b32.xlu0 %v6174_v47, %s8036_s18  ;;  %7342 = vrot.lane.b32.xlu1 %v8758_v23, %s8037_s21 }
 0x29d   :  { %7511 = vrot.lane.b32.xlu0 %v8758_v23, %s8039_s24  ;;  %7008 = vrot.lane.b32.xlu1 %v6174_v47, %s8033_s15 }
 0x2a1   :  { %7515 = vrot.lane.b32.xlu0 %v6174_v47, %s8039_s24  ;;  %7509 = vrot.lane.b32.xlu1 %v6171_v39, %s8039_s24 }
 0x2a5   :  { %7677 = vperm.xlu0 %8019, %v7674_v48   ;;  %7346 = vrot.lane.b32.xlu1 %v6174_v47, %s8037_s21 }
 0x2a9   :  { %7513 = vrot.lane.b32.xlu1 %v8784_v41, %s8039_s24 }
 0x2ad   :  { %7507 = vrot.lane.b32.xlu1 %v8751_v14, %s8039_s24 }
 0x2ca   :  { %v6184_v0 = vpop.permute.xlu0 %6183 }
 0x2cf   :  { %v8835_v3 = vpop.permute.xlu0 %6497  ;;  %v8837_v49 = vpop.permute.xlu1 %6187 }
 0x2d3   :  { %v6663_v1 = vpop.permute.xlu0 %6662  ;;  %v6494_v4 = vpop.permute.xlu1 %6493 }
 0x2d7   :  { %v8839_v50 = vpop.permute.xlu0 %6835  ;;  %v8841_v51 = vpop.permute.xlu1 %6666 }
 0x2db   :  { %v7001_v52 = vpop.permute.xlu0 %7000  ;;  %v6832_v53 = vpop.permute.xlu1 %6831 }
 0x2df   :  { %v8843_v6 = vpop.permute.xlu0 %7173  ;;  %v8845_v54 = vpop.permute.xlu1 %7004 }
 0x2e3   :  { %v6190_v55 = vpop.permute.xlu0 %6189  ;;  %v6186_v56 = vpop.permute.xlu1 %6185 }
 0x2e4   :  { %v6193_v5 = vsel %vm50_vm0, %v6184_v0, %v6186_v56  ;;  %v6194_v57 = vsel %vm50_vm0, %v6186_v56, %v8837_v49  ;;  %v6195_v22 = vsel %vm50_vm0, %v8837_v49, %v6190_v55 }
 0x2e5   :  { %6234 = vmatprep.subr.mxu1 %v6194_v57 }
 0x2e6   :  { %6235 = vmatpush1.msra.mxu1 %v6193_v5 }
 0x2e7   :  { %v6665_v58 = vpop.permute.xlu0 %6664  ;;  %7792 = vmatmul.mubr.msk.f32.vlgmr.msra.gmra.mxu1 %vm61_vm1, %v7791_v59  ;;  %6379 = vmatprep.subr.mxu1 %v6171_v39  ;;  %v6496_v60 = vpop.permute.xlu1 %6495 }
 0x2e8   :  { %6380 = vmatpush1.msra.mxu1 %v8751_v14  ;;  %v6504_v61 = vsel %vm506_vm3, %v6496_v60, %v8835_v3  ;;  %6413 = vmatprep.mubr.f32.mxu1 %v8026_v2  ;;  %v6503_v63 = vsel %vm506_vm3, %v6494_v4, %v6496_v60  ;;  %v6673_v9 = vsel %vm1241_vm6, %v6665_v58, %v8841_v51 }
 0x2e9   :  { %6544 = vmatprep.subr.mxu1 %v6504_v61  ;;  %v6672_v11 = vsel %vm1241_vm6, %v6663_v1, %v6665_v58 }
 0x2eb   :  { %v8862_v7 = vpop.permute.xlu0 %6668  ;;  %7794 = vmatmul.mubr.msk.f32.vlgmr.msra.gmra.mxu1 %vm61_vm1, %v6175_v62  ;;  %v6500_v8 = vpop.permute.xlu1 %6499 }
 0x2ec   :  { %6545 = vmatpush1.msra.mxu1 %v6503_v63  ;;  %6578 = vmatprep.mubr.f32.mxu1 %v8026_v2  ;;  %v6505_v34 = vsel %vm506_vm3, %v8835_v3, %v6500_v8  ;;  %v6674_v42 = vsel %vm1241_vm6, %v8841_v51, %v8862_v7 }
 0x2ed   :  { %6713 = vmatprep.subr.mxu1 %v6673_v9 }
 0x2ef   :  { %v7003_v12 = vpop.permute.xlu0 %7002  ;;  %7797 = vmatmul.mubr.msk.f32.vlgmr.msra.gmra.mxu1 %vm61_vm1, %v7796_v10  ;;  %v6834_v13 = vpop.permute.xlu1 %6833 }
 0x2f0   :  { %6714 = vmatpush1.msra.mxu1 %v6672_v11  ;;  %v6842_v14 = vsel %vm1486_vm7, %v6834_v13, %v8839_v50  ;;  %6747 = vmatprep.mubr.f32.mxu1 %v8026_v2  ;;  %v6841_v17 = vsel %vm1486_vm7, %v6832_v53, %v6834_v13  ;;  %v7011_v20 = vsel %vm1731_vm8, %v7003_v12, %v8845_v54 }
 0x2f1   :  { %6882 = vmatprep.subr.mxu1 %v6842_v14  ;;  %v7010_v25 = vsel %vm1731_vm8, %v7001_v52, %v7003_v12 }
 0x2f3   :  { %v8880_v18 = vpop.permute.xlu0 %7006  ;;  %7800 = vmatmul.mubr.msk.f32.vlgmr.msra.gmra.mxu1 %vm61_vm1, %v7799_v15  ;;  %v6838_v19 = vpop.permute.xlu1 %6837 }
 0x2f4   :  { %6883 = vmatpush1.msra.mxu1 %v6841_v17  ;;  %6916 = vmatprep.mubr.f32.mxu1 %v8026_v2  ;;  %v6843_v44 = vsel %vm1486_vm7, %v8839_v50, %v6838_v19  ;;  %v7012_v49 = vsel %vm1731_vm8, %v8845_v54, %v8880_v18 }
 0x2f5   :  { %7051 = vmatprep.subr.mxu1 %v7011_v20 }
 0x2f7   :  { %v7341_v26 = vpop.permute.xlu0 %7340  ;;  %7803 = vmatmul.mubr.msk.f32.vlgmr.msra.gmra.mxu1 %vm61_vm1, %v7802_v21  ;;  %v7172_v27 = vpop.permute.xlu1 %7171 }
 0x2f8   :  { %7052 = vmatpush1.msra.mxu1 %v7010_v25  ;;  %v7180_v28 = vsel %vm2466_vm11, %v7172_v27, %v8843_v6  ;;  %7085 = vmatprep.mubr.f32.mxu1 %v8026_v2 }
 0x2f9   :  { %7220 = vmatprep.subr.mxu1 %v7180_v28 }
 0x2fb   :  { %v6502_v32 = vpop.permute.xlu0 %6501  ;;  %v6192_v33 = vpop.permute.xlu1 %6191  ;;  %7806 = vmatmul.mubr.msk.f32.vlgmr.msra.gmra.mxu1 %vm61_vm1, %v7805_v30 }
 0x2fc   :  { %v6196_v16 = vsel %vm50_vm0, %v6190_v55, %v6192_v33  ;;  %7254 = vmatprep.mubr.f32.mxu1 %v8026_v2  ;;  %v6506_v31 = vsel %vm506_vm3, %v6500_v8, %v6502_v32 }
 0x2fd   :  { %6305 = vmatprep.subr.mxu0 %v6196_v16 }
 0x2fe   :  { %6306 = vmatpush1.msra.mxu0 %v6195_v22 }
 0x2ff   :  { %v8902_v24 = vpop.permute.xlu0 %7344  ;;  %7793 = vmatmul.mubr.msk.f32.vlgmr.msra.gmra.mxu0 %vm61_vm1, %v7791_v59  ;;  %6450 = vmatprep.subr.mxu0 %v8784_v41  ;;  %v7176_v29 = vpop.permute.xlu1 %7175  ;;  %v7814_v59 = vld [vmem:[%s8984_s3 + $0x40] sm:$0xff] }
 0x300   :  { %6451 = vmatpush1.msra.mxu0 %v8758_v23  ;;  %6484 = vmatprep.mubr.f32.mxu0 %v8026_v2  ;;  %v7181_v4 = vsel %vm2466_vm11, %v8843_v6, %v7176_v29 }
 0x301   :  { %6615 = vmatprep.subr.mxu0 %v6506_v31 }
 0x303   :  { %v6840_v35 = vpop.permute.xlu0 %6839  ;;  %7795 = vmatmul.mubr.msk.f32.vlgmr.msra.gmra.mxu0 %vm61_vm1, %v6175_v62  ;;  %v7170_v36 = vpop.permute.xlu1 %7169 }
 0x304   :  { %6616 = vmatpush1.msra.mxu0 %v6505_v34  ;;  %v7179_v38 = vsel %vm2466_vm11, %v7170_v36, %v7172_v27  ;;  %6649 = vmatprep.mubr.f32.mxu0 %v8026_v2  ;;  %v6844_v43 = vsel %vm1486_vm7, %v6838_v19, %v6840_v35 }
 0x305   :  { %7221 = vmatpush1.msra.mxu1 %v7179_v38 }
 0x306   :  { %7809 = vmatmul.mubr.msk.f32.vlgmr.msra.gmra.mxu1 %vm61_vm1, %v7808_v37 }
 0x307   :  { %v7339_v23 = vpop.permute.xlu0 %7338  ;;  %7798 = vmatmul.mubr.msk.f32.vlgmr.msra.gmra.mxu0 %vm61_vm1, %v7796_v10  ;;  %v6671_v39 = vpop.permute.xlu1 %6670  ;;  %7423 = vmatprep.mubr.f32.mxu1 %v8026_v2 }
 0x308   :  { %v6675_v41 = vsel %vm1241_vm6, %v8862_v7, %v6671_v39  ;;  %6818 = vmatprep.mubr.f32.mxu0 %v8026_v2  ;;  %v7348_v47 = vsel %vm2711_vm12, %v7339_v23, %v7341_v26 }
 0x309   :  { %6784 = vmatprep.subr.mxu0 %v6675_v41 }
 0x30a   :  { %6785 = vmatpush1.msra.mxu0 %v6674_v42 }
 0x30b   :  { %7801 = vmatmul.mubr.msk.f32.vlgmr.msra.gmra.mxu0 %vm61_vm1, %v7799_v15  ;;  %6953 = vmatprep.subr.mxu0 %v6844_v43  ;;  %v7343_v45 = vpop.permute.xlu1 %7342  ;;  %v7178_v48 = vpop.permute.xlu0 %7177 }
 0x30c   :  { %6954 = vmatpush1.msra.mxu0 %v6843_v44  ;;  %v7349_v40 = vsel %vm2711_vm12, %v7341_v26, %v7343_v45  ;;  %6987 = vmatprep.mubr.f32.mxu0 %v8026_v2  ;;  %v7182_v1 = vsel %vm2466_vm11, %v7176_v29, %v7178_v48  ;;  %v7350_v6 = vsel %vm2711_vm12, %v7343_v45, %v8902_v24 }
 0x30d   :  { %7389 = vmatprep.subr.mxu1 %v7349_v40 }
 0x30e   :  { %7390 = vmatpush1.msra.mxu1 %v7348_v47 }
 0x30f   :  { %7804 = vmatmul.mubr.msk.f32.vlgmr.msra.gmra.mxu0 %vm61_vm1, %v7802_v21  ;;  %7812 = vmatmul.mubr.msk.f32.vlgmr.msra.gmra.mxu1 %vm61_vm1, %v7811_v46  ;;  %v7009_v0 = vpop.permute.xlu1 %7008  ;;  %v7512_v50 = vpop.permute.xlu0 %7511 }
 0x310   :  { %v7013_v3 = vsel %vm1731_vm8, %v8880_v18, %v7009_v0  ;;  %7156 = vmatprep.mubr.f32.mxu0 %v8026_v2  ;;  %7592 = vmatprep.mubr.f32.mxu1 %v8026_v2 }
 0x311   :  { %7122 = vmatprep.subr.mxu0 %v7013_v3 }
 0x312   :  { %7123 = vmatpush1.msra.mxu0 %v7012_v49 }
 0x313   :  { %7807 = vmatmul.mubr.msk.f32.vlgmr.msra.gmra.mxu0 %vm61_vm1, %v7805_v30  ;;  %7291 = vmatprep.subr.mxu0 %v7182_v1  ;;  %v7510_v51 = vpop.permute.xlu1 %7509  ;;  %v7516_v55 = vpop.permute.xlu0 %7515 }
 0x314   :  { %7292 = vmatpush1.msra.mxu0 %v7181_v4  ;;  %v7518_v52 = vsel %vm2956_vm13, %v7510_v51, %v7512_v50  ;;  %7325 = vmatprep.mubr.f32.mxu0 %v8026_v2 }
 0x315   :  { %7558 = vmatprep.subr.mxu1 %v7518_v52 }
 0x317   :  { %7810 = vmatmul.mubr.msk.f32.vlgmr.msra.gmra.mxu0 %vm61_vm1, %v7808_v37  ;;  %v7347_v53 = vpop.permute.xlu1 %7346 }
 0x318   :  { %v7351_v54 = vsel %vm2711_vm12, %v8902_v24, %v7347_v53  ;;  %7494 = vmatprep.mubr.f32.mxu0 %v8026_v2 }
 0x319   :  { %7460 = vmatprep.subr.mxu0 %v7351_v54 }
 0x31a   :  { %7461 = vmatpush1.msra.mxu0 %v7350_v6 }
 0x31b   :  { %7813 = vmatmul.mubr.msk.f32.vlgmr.msra.gmra.mxu0 %vm61_vm1, %v7811_v46  ;;  %v7514_v56 = vpop.permute.xlu1 %7513 }
 0x31c   :  { %v7519_v5 = vsel %vm2956_vm13, %v7512_v50, %v7514_v56  ;;  %v7520_v57 = vsel %vm2956_vm13, %v7514_v56, %v7516_v55  ;;  %7663 = vmatprep.mubr.f32.mxu0 %v8026_v2 }
 0x31d   :  { %7629 = vmatprep.subr.mxu0 %v7520_v57 }
 0x31e   :  { %7630 = vmatpush1.msra.mxu0 %v7519_v5 }
 0x31f   :  { %7816 = vmatmul.mubr.msk.f32.vlgmr.msra.gmra.mxu0 %vm61_vm1, %v7814_v59  ;;  %v7508_v58 = vpop.permute.xlu1 %7507 }
 0x320   :  { %v7517_v60 = vsel %vm2956_vm13, %v7508_v58, %v7510_v51  ;;  %v7678_v5 = vpop.permute.xlu0 %7677 }
 0x321   :  { %7559 = vmatpush1.msra.mxu1 %v7517_v60 }
 0x322   :  { %7815 = vmatmul.mubr.msk.f32.vlgmr.msra.gmra.mxu1 %vm61_vm1, %v7814_v59 }
 0x3a7   :  { %v6270_v61 = vpop.f32.mrf.mxu1 }
 0x3a9   :  { %v6272_v62 = vpop.f32.mrf.mxu1 }
 0x3ab   :  { %v6415_v63 = vpop.f32.mrf.mxu1 }
 0x3ac   :  { %v6416_v19 = vadd.f32 %v6415_v63, %v6270_v61 }
 0x3ad   :  { %v6417_v7 = vpop.f32.mrf.mxu1 }
 0x3ae   :  { %v6418_v26 = vadd.f32 %v6417_v7, %v6272_v62 }
 0x3af   :  { %v6580_v8 = vpop.f32.mrf.mxu1 }
 0x3b0   :  { %v6656_v27 = vadd.f32 %v6580_v8, %v6416_v19 }
 0x3b1   :  { %v6582_v2 = vpop.f32.mrf.mxu1 }
 0x3b2   :  { %v6657_v33 = vadd.f32 %v6582_v2, %v6418_v26 }
 0x3b3   :  { %v6749_v9 = vpop.f32.mrf.mxu1 }
 0x3b4   :  { %v6825_v16 = vadd.f32 %v6749_v9, %v6656_v27 }
 0x3b5   :  { %v6751_v11 = vpop.f32.mrf.mxu1 }
 0x3b6   :  { %v6826_v36 = vadd.f32 %v6751_v11, %v6657_v33 }
 0x3b7   :  { %v6918_v14 = vpop.f32.mrf.mxu1 }
 0x3b8   :  { %v6994_v37 = vadd.f32 %v6918_v14, %v6825_v16 }
 0x3b9   :  { %v6920_v18 = vpop.f32.mrf.mxu1 }
 0x3ba   :  { %v6995_v45 = vadd.f32 %v6920_v18, %v6826_v36 }
 0x3bb   :  { %v7087_v25 = vpop.f32.mrf.mxu1 }
 0x3bc   :  { %v7163_v40 = vadd.f32 %v7087_v25, %v6994_v37 }
 0x3bd   :  { %v7089_v32 = vpop.f32.mrf.mxu1 }
 0x3be   :  { %v7164_v4 = vadd.f32 %v7089_v32, %v6995_v45 }
 0x3bf   :  { %v6341_v10 = vpop.f32.mrf.mxu0 }
 0x3c1   :  { %v6343_v12 = vpop.f32.mrf.mxu0 }
 0x3c3   :  { %v6486_v13 = vpop.f32.mrf.mxu0 }
 0x3c4   :  { %v6487_v24 = vadd.f32 %v6486_v13, %v6341_v10 }
 0x3c5   :  { %v6488_v15 = vpop.f32.mrf.mxu0 }
 0x3c6   :  { %v6489_v31 = vadd.f32 %v6488_v15, %v6343_v12  ;;  %v7256_v35 = vpop.f32.mrf.mxu1 }
 0x3c7   :  { %v6651_v17 = vpop.f32.mrf.mxu0  ;;  %v7332_v50 = vadd.f32 %v7256_v35, %v7163_v40 }
 0x3c8   :  { %v6658_v34 = vadd.f32 %v6651_v17, %v6487_v24  ;;  %v7258_v43 = vpop.f32.mrf.mxu1 }
 0x3c9   :  { %v6653_v20 = vpop.f32.mrf.mxu0  ;;  %v7333_v57 = vadd.f32 %v7258_v43, %v7164_v4 }
 0x3ca   :  { %v6659_v23 = vadd.f32 %v6653_v20, %v6489_v31 }
 0x3cb   :  { %v6820_v21 = vpop.f32.mrf.mxu0 }
 0x3cc   :  { %v6827_v39 = vadd.f32 %v6820_v21, %v6658_v34 }
 0x3cd   :  { %v6822_v28 = vpop.f32.mrf.mxu0 }
 0x3ce   :  { %v6828_v42 = vadd.f32 %v6822_v28, %v6659_v23 }
 0x3cf   :  { %v6989_v30 = vpop.f32.mrf.mxu0  ;;  %v7425_v3 = vpop.f32.mrf.mxu1 }
 0x3d0   :  { %v6996_v44 = vadd.f32 %v6989_v30, %v6827_v39  ;;  %v7501_v59 = vadd.f32 %v7425_v3, %v7332_v50 }
 0x3d1   :  { %v6991_v22 = vpop.f32.mrf.mxu0  ;;  %v7427_v6 = vpop.f32.mrf.mxu1 }
 0x3d2   :  { %v6997_v47 = vadd.f32 %v6991_v22, %v6828_v42  ;;  %v7502_v63 = vadd.f32 %v7427_v6, %v7333_v57 }
 0x3d3   :  { %v7158_v29 = vpop.f32.mrf.mxu0 }
 0x3d4   :  { %v7165_v48 = vadd.f32 %v7158_v29, %v6996_v44 }
 0x3d5   :  { %v7160_v38 = vpop.f32.mrf.mxu0 }
 0x3d6   :  { %v7166_v49 = vadd.f32 %v7160_v38, %v6997_v47 }
 0x3d7   :  { %v7327_v41 = vpop.f32.mrf.mxu0 }
 0x3d8   :  { %v7334_v1 = vadd.f32 %v7327_v41, %v7165_v48 }
 0x3d9   :  { %v7329_v46 = vpop.f32.mrf.mxu0 }
 0x3da   :  { %v7335_v52 = vadd.f32 %v7329_v46, %v7166_v49 }
 0x3db   :  { %v7496_v0 = vpop.f32.mrf.mxu0 }
 0x3dc   :  { %v7503_v53 = vadd.f32 %v7496_v0, %v7334_v1 }
 0x3dd   :  { %v7498_v51 = vpop.f32.mrf.mxu0 }
 0x3de   :  { %v7504_v55 = vadd.f32 %v7498_v51, %v7335_v52 }
 0x3df   :  { %v7665_v54 = vpop.f32.mrf.mxu0 }
 0x3e0   :  { %v7672_v56 = vadd.f32 %v7665_v54, %v7503_v53 }
 0x3e1   :  { %v7667_v58 = vpop.f32.mrf.mxu0 }
 0x3e2   :  { %v7682_v60 = vadd.f32 %v7678_v5, %v7672_v56  ;;  %v7673_v61 = vadd.f32 %v7667_v58, %v7504_v55  ;;  %v7594_v62 = vpop.f32.mrf.mxu1 }
 0x3e3   :  { %v7670_v7 = vadd.f32 %v7594_v62, %v7501_v59 }
 0x3e4   :  { %7686 = vst [vmem:[%s8985_s6 + $0x10] sm:$0xff] %v7682_v60  ;;  %v7683_v8 = vadd.f32 %v7678_v5, %v7673_v61  ;;  %v7596_v2 = vpop.f32.mrf.mxu1 }
 0x3e5   :  { %v7680_v9 = vadd.f32 %v7678_v5, %v7670_v7  ;;  %v7671_v10 = vadd.f32 %v7596_v2, %v7502_v63 }
 0x3e6   :  { %7687 = vst [vmem:[%s8985_s6 + $0x18] sm:$0xff] %v7683_v8 }
 0x3e7   :  { %7684 = vst [vmem:[%s8985_s6] sm:$0xff] %v7680_v9  ;;  %v7681_v11 = vadd.f32 %v7678_v5, %v7671_v10 }
 0x3e9   :  { %7685 = vst [vmem:[%s8985_s6 + $0x8] sm:$0xff] %v7681_v11 }

</bundles_post_ra>
